<compile_context>
chip_gen: v5e
topology: v5e:2x2
jax: 0.10.0
libtpu: 0.0.40
codegen_flags: <defaults>
</compile_context>

<pallas_src>
import functools
import math

import jax
import jax.numpy as jnp
from jax.experimental import pallas as pl
from jax.experimental.pallas import tpu as pltpu

EPS = 1e-5
NEG_INF = -1e9


def _layer_norm(x, g, b):
    mu = jnp.mean(x, axis=-1, keepdims=True)
    var = jnp.mean((x - mu) ** 2, axis=-1, keepdims=True)
    return (x - mu) * jax.lax.rsqrt(var + EPS) * g + b


def clip_encoder_kernel(x_ref, bias_ref, sel_ref,
                        ln1g_ref, ln1b_ref,
                        wqkv_ref, bqkv_ref,
                        wo_ref, bo_ref,
                        ln2g_ref, ln2b_ref,
                        w1_ref, b1_ref, w2_ref, b2_ref,
                        lnfg_ref, lnfb_ref,
                        pooled_ref,
                        x_scratch,
                        *, num_heads):
    l = pl.program_id(0)
    n_layers = pl.num_programs(0)

    B, S, D = x_scratch.shape
    H = num_heads
    Dh = D // H
    BS = B * S

    # Load the embedded sequences once; the activation stays resident in VMEM
    # scratch while per-layer weights stream over the (single) layer grid axis.
    @pl.when(l == 0)
    def _():
        x_scratch[...] = x_ref[...].astype(jnp.float32)

    x = x_scratch[...].reshape(BS, D)              # (B*S, D) f32 residual stream

    # ---------------- self-attention (pre-LN, causal) ----------------
    h = _layer_norm(x, ln1g_ref[0], ln1b_ref[0])
    hb = h.astype(jnp.bfloat16)
    # Fused QKV projection; the 1/sqrt(Dh) scale is pre-folded into Wq/bq.
    qkv = jnp.dot(hb, wqkv_ref[0], preferred_element_type=jnp.float32) + bqkv_ref[0]
    qkv_b = qkv.astype(jnp.bfloat16).reshape(B, S, 3 * D)

    wo = wo_ref[0]                                  # (D, D) bf16, VMEM resident
    attn = jnp.zeros((BS, D), jnp.float32)
    for hh in range(H):                             # static head loop: lane slices, no transposes
        q_h = qkv_b[:, :, hh * Dh:(hh + 1) * Dh]                 # (B, S, Dh)
        k_h = qkv_b[:, :, D + hh * Dh:D + (hh + 1) * Dh]
        v_h = qkv_b[:, :, 2 * D + hh * Dh:2 * D + (hh + 1) * Dh]
        s = jax.lax.dot_general(q_h, k_h, (((2,), (2,)), ((0,), (0,))),
                                preferred_element_type=jnp.float32)   # (B, S, S)
        s = s + bias_ref[...]                        # additive causal bias
        s = s - jnp.max(s, axis=-1, keepdims=True)
        p = jnp.exp(s)
        p = p * pl.reciprocal(jnp.sum(p, axis=-1, keepdims=True), approx=True)
        o = jax.lax.dot_general(p.astype(jnp.bfloat16), v_h,
                                (((2,), (1,)), ((0,), (0,))),
                                preferred_element_type=jnp.float32)   # (B, S, Dh)
        # Per-head output projection (sum_h o_h @ Wo[h-rows]) == concat(o)@Wo,
        # avoiding the (S,H,Dh)<->(H,S,Dh) relayouts.
        attn = attn + jnp.dot(o.reshape(BS, Dh).astype(jnp.bfloat16),
                              wo[hh * Dh:(hh + 1) * Dh, :],
                              preferred_element_type=jnp.float32)
    x = x + attn + bo_ref[0]

    # ---------------- MLP (pre-LN, quick GELU) ----------------
    h = _layer_norm(x, ln2g_ref[0], ln2b_ref[0])
    m1 = jnp.dot(h.astype(jnp.bfloat16), w1_ref[0],
                 preferred_element_type=jnp.float32) + b1_ref[0]
    m1 = m1 * jax.nn.sigmoid(1.702 * m1)            # quick GELU (CLIP), f32
    m2 = jnp.dot(m1.astype(jnp.bfloat16), w2_ref[0],
                 preferred_element_type=jnp.float32) + b2_ref[0]
    x = x + m2
    x_scratch[...] = x.reshape(B, S, D)

    # -------- final LayerNorm + EOS pooling (last layer only) --------
    @pl.when(l == n_layers - 1)
    def _():
        hid = _layer_norm(x, lnfg_ref[...], lnfb_ref[...])        # (B*S, D)
        # sel_ref: host-built (B, B*S) one-hot picking each batch's EOS row.
        pooled_ref[...] = jnp.dot(sel_ref[...], hid,
                                  preferred_element_type=jnp.float32
                                  ).astype(pooled_ref.dtype)


def pack_clip_params(params, num_heads):
    """Fuse Wq/Wk/Wv -> Wqkv and fold the 1/sqrt(Dh) attention scale into Wq/bq."""
    D = params['wq'].shape[1]
    Dh = D // num_heads
    scale = 1.0 / math.sqrt(Dh)
    wdt = params['wq'].dtype
    wq = (params['wq'].astype(jnp.float32) * scale).astype(wdt)
    bq = params['bq'] * scale
    packed = {k: v for k, v in params.items()
              if k not in ('wq', 'wk', 'wv', 'bq', 'bk', 'bv')}
    packed['wqkv'] = jnp.concatenate([wq, params['wk'], params['wv']], axis=-1)   # (L, D, 3D)
    packed['bqkv'] = jnp.concatenate([bq, params['bk'], params['bv']], axis=-1)   # (L, 1, 3D)
    return packed


def clip_text_encoder_forward(token_ids, packed, num_heads):
    """token_ids: (B, S) int32. Returns dict with 'pooler_output' (B, D) f32."""
    B, S0 = token_ids.shape
    D = packed['tok_emb'].shape[1]
    L = packed['wqkv'].shape[0]
    F = packed['w1'].shape[2]

    # Pad the sequence to a sublane multiple; valid rows stay exact because the
    # causal bias prevents them from attending to padded key columns.
    S = max(8, ((S0 + 7) // 8) * 8)

    # Glue: embedding lookups (gather) stay in plain JAX.
    tok = jnp.take(packed['tok_emb'], token_ids, axis=0)          # (B, S0, D)
    pos = packed['pos_emb'][:S0][None]                            # (1, S0, D)
    x = (tok + pos).astype(jnp.float32)
    if S != S0:
        x = jnp.pad(x, ((0, 0), (0, S - S0), (0, 0)))

    # Additive causal bias built once (no per-layer iota/compare/select in-kernel).
    row = jnp.arange(S)[:, None]
    col = jnp.arange(S)[None, :]
    attn_bias = jnp.where(col <= row, 0.0, NEG_INF).astype(jnp.float32)   # (S, S)

    # CLIP pooling position: highest token id (EOS).  Built as a one-hot
    # selection matrix over the flattened (B*S) rows so pooling is a tiny
    # in-kernel matmul (no gather / dynamic slice inside the kernel).
    eos_idx = jnp.argmax(token_ids, axis=-1).astype(jnp.int32)            # (B,)
    flat_eos = jnp.arange(B, dtype=jnp.int32) * S + eos_idx
    sel = (jnp.arange(B * S, dtype=jnp.int32)[None, :]
           == flat_eos[:, None]).astype(jnp.float32)                       # (B, B*S)

    def wspec(shape):
        nd = len(shape)
        return pl.BlockSpec((1,) + tuple(shape[1:]),
                            lambda l, _nd=nd: (l,) + (0,) * (_nd - 1))

    def cspec(shape):
        nd = len(shape)
        return pl.BlockSpec(tuple(shape), lambda l, _nd=nd: (0,) * _nd)

    in_specs = [
        cspec((B, S, D)),                             # x: fetched once (constant index over l)
        cspec((S, S)),                                # causal additive bias
        cspec((B, B * S)),                            # EOS one-hot selection
        wspec((L, 1, D)), wspec((L, 1, D)),           # ln1 gamma/beta
        wspec((L, D, 3 * D)), wspec((L, 1, 3 * D)),   # fused Wqkv, bqkv
        wspec((L, D, D)), wspec((L, 1, D)),           # Wo, bo
        wspec((L, 1, D)), wspec((L, 1, D)),           # ln2 gamma/beta
        wspec((L, D, F)), wspec((L, 1, F)),           # W1, b1
        wspec((L, F, D)), wspec((L, 1, D)),           # W2, b2
        cspec((1, D)), cspec((1, D)),                 # final LN gamma/beta
    ]
    out_specs = pl.BlockSpec((B, D), lambda l: (0, 0))  # pooler_output only

    # VMEM budget: double-buffered per-layer weights + resident activations.
    def nbytes(a):
        return int(a.size) * a.dtype.itemsize
    per_layer = sum(nbytes(packed[k]) for k in
                    ('ln1_g', 'ln1_b', 'wqkv', 'bqkv', 'wo', 'bo',
                     'ln2_g', 'ln2_b', 'w1', 'b1', 'w2', 'b2')) // L
    resident = (nbytes(x) + int(attn_bias.size) * 4 + int(sel.size) * 4
                + 2 * D * 4 + B * S * D * 4 + 2 * B * D * 4)
    vmem_limit = int(min(100 << 20, max(32 << 20, 2 * per_layer + resident + (8 << 20))))

    kern = functools.partial(clip_encoder_kernel, num_heads=num_heads)
    pooled = pl.pallas_call(
        kern,
        out_shape=jax.ShapeDtypeStruct((B, D), jnp.float32),
        grid_spec=pltpu.PrefetchScalarGridSpec(
            num_scalar_prefetch=0,
            grid=(L,),                                 # weights DMA'd once per layer, reused for all B
            in_specs=in_specs,
            out_specs=out_specs,
            scratch_shapes=[pltpu.VMEM((B, S, D), jnp.float32)]),  # resident activations
        compiler_params=pltpu.CompilerParams(
            # TODO(synk): add a real "parallel" grid axis (split heads / MLP F)
            # so v7x's second TensorCore is used when B is small.
            dimension_semantics=("arbitrary",),
            vmem_limit_bytes=vmem_limit),
    )(x, attn_bias, sel,
      packed['ln1_g'], packed['ln1_b'],
      packed['wqkv'], packed['bqkv'],
      packed['wo'], packed['bo'],
      packed['ln2_g'], packed['ln2_b'],
      packed['w1'], packed['b1'], packed['w2'], packed['b2'],
      packed['lnf_g'], packed['lnf_b'])

    return {'pooler_output': pooled}


class CLIPEncoderOutput:
    def __init__(self, dictionary):
        self.pooler_output = dictionary['pooler_output']


class NeuronFluxCLIPTextEncoderModel:
    """JAX/Pallas port of the PyTorch wrapper: forward(emb, output_hidden_states)."""

    def __init__(self, dtype, params, num_heads):
        self.dtype = dtype
        self.num_heads = num_heads
        self.params = pack_clip_params(params, num_heads)   # fuse QKV + fold scale once

    def forward(self, emb, output_hidden_states=False):
        # output_hidden_states accepted for API parity; only pooler_output is used.
        out = clip_text_encoder_forward(emb, self.params, self.num_heads)
        out['pooler_output'] = out['pooler_output'].astype(self.dtype)
        return CLIPEncoderOutput(out)

    __call__ = forward


def init_params(key, vocab, max_pos, d_model, d_mlp, n_layers):
    wdt = jnp.bfloat16  # bf16 weights: halves DMA bytes + doubles MXU throughput

    def nrm(k, shape, scale=0.02, dtype=jnp.float32):
        return (scale * jax.random.normal(k, shape)).astype(dtype)

    keys = jax.random.split(key, 8)
    L, D, F = n_layers, d_model, d_mlp
    params = {
        'tok_emb': nrm(keys[0], (vocab, D)),
        'pos_emb': nrm(keys[1], (max_pos, D)),
        'lnf_g': jnp.ones((1, D), jnp.float32),
        'lnf_b': jnp.zeros((1, D), jnp.float32),
        # per-layer params stacked on a leading layer axis (streamed over grid axis l)
        'ln1_g': jnp.ones((L, 1, D), jnp.float32),
        'ln1_b': jnp.zeros((L, 1, D), jnp.float32),
        'ln2_g': jnp.ones((L, 1, D), jnp.float32),
        'ln2_b': jnp.zeros((L, 1, D), jnp.float32),
        'wq': nrm(keys[2], (L, D, D), dtype=wdt), 'bq': jnp.zeros((L, 1, D), jnp.float32),
        'wk': nrm(keys[3], (L, D, D), dtype=wdt), 'bk': jnp.zeros((L, 1, D), jnp.float32),
        'wv': nrm(keys[4], (L, D, D), dtype=wdt), 'bv': jnp.zeros((L, 1, D), jnp.float32),
        'wo': nrm(keys[5], (L, D, D), dtype=wdt), 'bo': jnp.zeros((L, 1, D), jnp.float32),
        'w1': nrm(keys[6], (L, D, F), dtype=wdt), 'b1': jnp.zeros((L, 1, F), jnp.float32),
        'w2': nrm(keys[7], (L, F, D), dtype=wdt), 'b2': jnp.zeros((L, 1, D), jnp.float32),
    }
    return params


def clip_reference(token_ids, params, num_heads):
    """Pure-JAX f32 reference of the same synthetic CLIP text encoder (pooled output)."""
    B, S = token_ids.shape
    D = params['tok_emb'].shape[1]
    L = params['wq'].shape[0]
    H = num_heads
    Dh = D // H

    def f32(a):
        return a.astype(jnp.float32)

    def ln(v, g, b):
        mu = v.mean(-1, keepdims=True)
        var = ((v - mu) ** 2).mean(-1, keepdims=True)
        return (v - mu) / jnp.sqrt(var + EPS) * g + b

    x = jnp.take(f32(params['tok_emb']), token_ids, axis=0) + f32(params['pos_emb'])[:S][None]
    mask = jnp.where(jnp.arange(S)[None, :] <= jnp.arange(S)[:, None], 0.0, NEG_INF)

    for l in range(L):
        h = ln(x, f32(params['ln1_g'][l]), f32(params['ln1_b'][l]))
        q = h @ f32(params['wq'][l]) + f32(params['bq'][l])
        k = h @ f32(params['wk'][l]) + f32(params['bk'][l])
        v = h @ f32(params['wv'][l]) + f32(params['bv'][l])
        q = q * (1.0 / math.sqrt(Dh))
        q = q.reshape(B, S, H, Dh).transpose(0, 2, 1, 3)
        k = k.reshape(B, S, H, Dh).transpose(0, 2, 1, 3)
        v = v.reshape(B, S, H, Dh).transpose(0, 2, 1, 3)
        s = jnp.einsum('bhqd,bhkd->bhqk', q, k) + mask
        p = jax.nn.softmax(s, axis=-1)
        o = jnp.einsum('bhqk,bhkd->bhqd', p, v).transpose(0, 2, 1, 3).reshape(B, S, D)
        x = x + o @ f32(params['wo'][l]) + f32(params['bo'][l])
        h = ln(x, f32(params['ln2_g'][l]), f32(params['ln2_b'][l]))
        m = h @ f32(params['w1'][l]) + f32(params['b1'][l])
        m = m * jax.nn.sigmoid(1.702 * m)
        x = x + m @ f32(params['w2'][l]) + f32(params['b2'][l])

    hid = ln(x, f32(params['lnf_g']), f32(params['lnf_b']))
    eos = jnp.argmax(token_ids, axis=-1)
    return hid[jnp.arange(B), eos]


if __name__ == "__main__":
    # Small synthetic CLIP text encoder config.
    B, S, D, H, F = 2, 8, 32, 2, 64
    VOCAB, MAX_POS, LAYERS = 64, 16, 2

    key = jax.random.PRNGKey(0)
    pkey, ikey = jax.random.split(key)
    params = init_params(pkey, VOCAB, MAX_POS, D, F, LAYERS)

    # `emb` in the PyTorch module is the tokenized prompt (token ids).
    emb = jax.random.randint(ikey, (B, S), 0, VOCAB, dtype=jnp.int32)

    model = NeuronFluxCLIPTextEncoderModel(jnp.float32, params, num_heads=H)
    out = model(emb, output_hidden_states=False)
    pooled = jax.block_until_ready(out.pooler_output)
    assert pooled.shape == (B, D) and pooled.dtype == jnp.float32

    # Loose-tolerance parity check vs a pure-JAX f32 reference (kernel uses
    # bf16 matmul operands and an approx softmax reciprocal).
    ref = jax.block_until_ready(clip_reference(emb, params, H))
    err = float(jnp.max(jnp.abs(pooled - ref)))
    assert err < 5e-2, f"max abs err vs reference: {err}"
    print("KERNEL_OK")
</pallas_src>

<mosaic_0001>
module attributes {stable_mosaic.version = 11 : i64} {
  func.func @clip_encoder_kernel(%arg0: i32, %arg1: memref<2x8x32xf32, #tpu.memory_space<vmem>>, %arg2: memref<8x8xf32, #tpu.memory_space<vmem>>, %arg3: memref<2x16xf32, #tpu.memory_space<vmem>>, %arg4: memref<1x1x32xf32, #tpu.memory_space<vmem>>, %arg5: memref<1x1x32xf32, #tpu.memory_space<vmem>>, %arg6: memref<1x32x96xbf16, #tpu.memory_space<vmem>>, %arg7: memref<1x1x96xf32, #tpu.memory_space<vmem>>, %arg8: memref<1x32x32xbf16, #tpu.memory_space<vmem>>, %arg9: memref<1x1x32xf32, #tpu.memory_space<vmem>>, %arg10: memref<1x1x32xf32, #tpu.memory_space<vmem>>, %arg11: memref<1x1x32xf32, #tpu.memory_space<vmem>>, %arg12: memref<1x32x64xbf16, #tpu.memory_space<vmem>>, %arg13: memref<1x1x64xf32, #tpu.memory_space<vmem>>, %arg14: memref<1x64x32xbf16, #tpu.memory_space<vmem>>, %arg15: memref<1x1x32xf32, #tpu.memory_space<vmem>>, %arg16: memref<1x32xf32, #tpu.memory_space<vmem>>, %arg17: memref<1x32xf32, #tpu.memory_space<vmem>>, %arg18: memref<2x32xf32, #tpu.memory_space<vmem>>, %arg19: memref<2x8x32xf32, #tpu.memory_space<vmem>>) attributes {dimension_semantics = [#tpu.dimension_semantics<arbitrary>], iteration_bounds = array<i64: 2>, scalar_prefetch = 0 : i64, scratch_operands = 1 : i64, tpu.core_type = #tpu.core_type<tc>, window_params = [{pipeline_mode = #tpu.pipeline_mode<synchronous>, transform_indices = @transform_0, window_bounds = array<i64: 2, 8, 32>}, {pipeline_mode = #tpu.pipeline_mode<synchronous>, transform_indices = @transform_1, window_bounds = array<i64: 8, 8>}, {pipeline_mode = #tpu.pipeline_mode<synchronous>, transform_indices = @transform_2, window_bounds = array<i64: 2, 16>}, {transform_indices = @transform_3, window_bounds = array<i64: 1, 1, 32>}, {transform_indices = @transform_4, window_bounds = array<i64: 1, 1, 32>}, {transform_indices = @transform_5, window_bounds = array<i64: 1, 32, 96>}, {transform_indices = @transform_6, window_bounds = array<i64: 1, 1, 96>}, {transform_indices = @transform_7, window_bounds = array<i64: 1, 32, 32>}, {transform_indices = @transform_8, window_bounds = array<i64: 1, 1, 32>}, {transform_indices = @transform_9, window_bounds = array<i64: 1, 1, 32>}, {transform_indices = @transform_10, window_bounds = array<i64: 1, 1, 32>}, {transform_indices = @transform_11, window_bounds = array<i64: 1, 32, 64>}, {transform_indices = @transform_12, window_bounds = array<i64: 1, 1, 64>}, {transform_indices = @transform_13, window_bounds = array<i64: 1, 64, 32>}, {transform_indices = @transform_14, window_bounds = array<i64: 1, 1, 32>}, {pipeline_mode = #tpu.pipeline_mode<synchronous>, transform_indices = @transform_15, window_bounds = array<i64: 1, 32>}, {pipeline_mode = #tpu.pipeline_mode<synchronous>, transform_indices = @transform_16, window_bounds = array<i64: 1, 32>}, {pipeline_mode = #tpu.pipeline_mode<synchronous>, transform_indices = @transform_17, window_bounds = array<i64: 2, 32>}]} {
    %c0_i32 = arith.constant 0 : i32
    %0 = arith.cmpi eq, %arg0, %c0_i32 : i32
    %1 = arith.extui %0 : i1 to i32
    %c0_i32_0 = arith.constant 0 : i32
    %2 = arith.cmpi ne, %1, %c0_i32_0 : i32
    scf.if %2 {
      %c0_72 = arith.constant 0 : index
      %c0_73 = arith.constant 0 : index
      %c0_74 = arith.constant 0 : index
      %155 = vector.load %arg1[%c0_72, %c0_73, %c0_74] : memref<2x8x32xf32, #tpu.memory_space<vmem>>, vector<2x8x32xf32>
      %c0_75 = arith.constant 0 : index
      %c0_76 = arith.constant 0 : index
      %c0_77 = arith.constant 0 : index
      %156 = vector.load %arg19[%c0_75, %c0_76, %c0_77] : memref<2x8x32xf32, #tpu.memory_space<vmem>>, vector<2x8x32xf32>
      tpu.vector_store %arg19[%c0_75, %c0_76, %c0_77], %155 {strides = array<i32>} : memref<2x8x32xf32, #tpu.memory_space<vmem>>, vector<2x8x32xf32>,
    } else {
    }
    %c0 = arith.constant 0 : index
    %c0_1 = arith.constant 0 : index
    %c0_2 = arith.constant 0 : index
    %3 = vector.load %arg19[%c0, %c0_1, %c0_2] : memref<2x8x32xf32, #tpu.memory_space<vmem>>, vector<2x8x32xf32>
    %4 = vector.shape_cast %3 : vector<2x8x32xf32> to vector<16x32xf32>
    %c0_3 = arith.constant 0 : index
    %c0_4 = arith.constant 0 : index
    %c0_5 = arith.constant 0 : index
    %5 = vector.load %arg4[%c0_3, %c0_4, %c0_5] : memref<1x1x32xf32, #tpu.memory_space<vmem>>, vector<1x1x32xf32>
    %6 = vector.shape_cast %5 : vector<1x1x32xf32> to vector<1x32xf32>
    %c0_6 = arith.constant 0 : index
    %c0_7 = arith.constant 0 : index
    %c0_8 = arith.constant 0 : index
    %7 = vector.load %arg5[%c0_6, %c0_7, %c0_8] : memref<1x1x32xf32, #tpu.memory_space<vmem>>, vector<1x1x32xf32>
    %8 = vector.shape_cast %7 : vector<1x1x32xf32> to vector<1x32xf32>
    %cst = arith.constant dense<0.000000e+00> : vector<16xf32>
    %9 = vector.multi_reduction <add>, %4, %cst [1] : vector<16x32xf32> to vector<16xf32>
    %10 = vector.shape_cast %9 : vector<16xf32> to vector<16x1xf32>
    %cst_9 = arith.constant 3.200000e+01 : f32
    %11 = vector.broadcast %cst_9 : f32 to vector<16x1xf32>
    %12 = arith.divf %10, %11 : vector<16x1xf32>
    %13 = vector.broadcast %12 : vector<16x1xf32> to vector<16x32xf32>
    %14 = arith.subf %4, %13 : vector<16x32xf32>
    %15 = arith.mulf %14, %14 : vector<16x32xf32>
    %cst_10 = arith.constant dense<0.000000e+00> : vector<16xf32>
    %16 = vector.multi_reduction <add>, %15, %cst_10 [1] : vector<16x32xf32> to vector<16xf32>
    %17 = vector.shape_cast %16 : vector<16xf32> to vector<16x1xf32>
    %cst_11 = arith.constant 3.200000e+01 : f32
    %18 = vector.broadcast %cst_11 : f32 to vector<16x1xf32>
    %19 = arith.divf %17, %18 : vector<16x1xf32>
    %20 = vector.broadcast %12 : vector<16x1xf32> to vector<16x32xf32>
    %21 = arith.subf %4, %20 : vector<16x32xf32>
    %cst_12 = arith.constant 9.99999974E-6 : f32
    %22 = vector.broadcast %cst_12 : f32 to vector<16x1xf32>
    %23 = arith.addf %19, %22 : vector<16x1xf32>
    %24 = math.rsqrt %23 : vector<16x1xf32>
    %25 = vector.broadcast %24 : vector<16x1xf32> to vector<16x32xf32>
    %26 = arith.mulf %21, %25 : vector<16x32xf32>
    %27 = vector.broadcast %6 : vector<1x32xf32> to vector<16x32xf32>
    %28 = arith.mulf %26, %27 : vector<16x32xf32>
    %29 = vector.broadcast %8 : vector<1x32xf32> to vector<16x32xf32>
    %30 = arith.addf %28, %29 : vector<16x32xf32>
    %31 = arith.truncf %30 : vector<16x32xf32> to vector<16x32xbf16>
    %c0_13 = arith.constant 0 : index
    %c0_14 = arith.constant 0 : index
    %c0_15 = arith.constant 0 : index
    %32 = vector.load %arg6[%c0_13, %c0_14, %c0_15] : memref<1x32x96xbf16, #tpu.memory_space<vmem>>, vector<1x32x96xbf16>
    %33 = vector.shape_cast %32 : vector<1x32x96xbf16> to vector<32x96xbf16>
    %cst_16 = arith.constant dense<0.000000e+00> : vector<16x96xf32>
    %34 = tpu.matmul %31, %33, %cst_16 {dimension_numbers = #tpu.dot_dimension_numbers<[1], [0], [0], [1], [0, 0, 1, 1], [], []>} : vector<16x32xbf16>, vector<32x96xbf16>, vector<16x96xf32> -> vector<16x96xf32>
    %c0_17 = arith.constant 0 : index
    %c0_18 = arith.constant 0 : index
    %c0_19 = arith.constant 0 : index
    %35 = vector.load %arg7[%c0_17, %c0_18, %c0_19] : memref<1x1x96xf32, #tpu.memory_space<vmem>>, vector<1x1x96xf32>
    %36 = vector.shape_cast %35 : vector<1x1x96xf32> to vector<1x96xf32>
    %37 = vector.broadcast %36 : vector<1x96xf32> to vector<16x96xf32>
    %38 = arith.addf %34, %37 : vector<16x96xf32>
    %39 = arith.truncf %38 : vector<16x96xf32> to vector<16x96xbf16>
    %40 = vector.shape_cast %39 : vector<16x96xbf16> to vector<2x8x96xbf16>
    %c0_20 = arith.constant 0 : index
    %c0_21 = arith.constant 0 : index
    %c0_22 = arith.constant 0 : index
    %41 = vector.load %arg8[%c0_20, %c0_21, %c0_22] : memref<1x32x32xbf16, #tpu.memory_space<vmem>>, vector<1x32x32xbf16>
    %42 = vector.shape_cast %41 : vector<1x32x32xbf16> to vector<32x32xbf16>
    %cst_23 = arith.constant 0.000000e+00 : f32
    %43 = vector.broadcast %cst_23 : f32 to vector<16x32xf32>
    %44 = vector.extract_strided_slice %40 {offsets = [0, 0, 0], sizes = [2, 8, 16], strides = [1, 1, 1]} : vector<2x8x96xbf16> to vector<2x8x16xbf16>
    %45 = vector.extract_strided_slice %40 {offsets = [0, 0, 32], sizes = [2, 8, 16], strides = [1, 1, 1]} : vector<2x8x96xbf16> to vector<2x8x16xbf16>
    %46 = vector.extract_strided_slice %40 {offsets = [0, 0, 64], sizes = [2, 8, 16], strides = [1, 1, 1]} : vector<2x8x96xbf16> to vector<2x8x16xbf16>
    %cst_24 = arith.constant dense<0.000000e+00> : vector<2x8x8xf32>
    %47 = tpu.matmul %44, %45, %cst_24 {dimension_numbers = #tpu.dot_dimension_numbers<[2], [2], [1], [1], [0, 0, 0, 1, 1, 1], [0], [0]>} : vector<2x8x16xbf16>, vector<2x8x16xbf16>, vector<2x8x8xf32> -> vector<2x8x8xf32>
    %c0_25 = arith.constant 0 : index
    %c0_26 = arith.constant 0 : index
    %48 = vector.load %arg2[%c0_25, %c0_26] : memref<8x8xf32, #tpu.memory_space<vmem>>, vector<8x8xf32>
    %49 = vector.shape_cast %48 : vector<8x8xf32> to vector<1x8x8xf32>
    %50 = vector.broadcast %49 : vector<1x8x8xf32> to vector<2x8x8xf32>
    %51 = arith.addf %47, %50 : vector<2x8x8xf32>
    %cst_27 = arith.constant dense<0xFF800000> : vector<2x8xf32>
    %52 = vector.multi_reduction <maximumf>, %51, %cst_27 [2] : vector<2x8x8xf32> to vector<2x8xf32>
    %53 = vector.shape_cast %52 : vector<2x8xf32> to vector<2x8x1xf32>
    %54 = vector.broadcast %53 : vector<2x8x1xf32> to vector<2x8x8xf32>
    %55 = arith.subf %51, %54 : vector<2x8x8xf32>
    %56 = math.exp %55 : vector<2x8x8xf32>
    %cst_28 = arith.constant dense<0.000000e+00> : vector<2x8xf32>
    %57 = vector.multi_reduction <add>, %56, %cst_28 [2] : vector<2x8x8xf32> to vector<2x8xf32>
    %58 = vector.shape_cast %57 : vector<2x8xf32> to vector<2x8x1xf32>
    %59 = tpu.reciprocal %58 {approx = true} : vector<2x8x1xf32> -> vector<2x8x1xf32>
    %60 = vector.broadcast %59 : vector<2x8x1xf32> to vector<2x8x8xf32>
    %61 = arith.mulf %56, %60 : vector<2x8x8xf32>
    %62 = arith.truncf %61 : vector<2x8x8xf32> to vector<2x8x8xbf16>
    %cst_29 = arith.constant dense<0.000000e+00> : vector<2x8x16xf32>
    %63 = tpu.matmul %62, %46, %cst_29 {dimension_numbers = #tpu.dot_dimension_numbers<[2], [1], [1], [2], [0, 0, 0, 1, 1, 2], [0], [0]>} : vector<2x8x8xbf16>, vector<2x8x16xbf16>, vector<2x8x16xf32> -> vector<2x8x16xf32>
    %64 = vector.shape_cast %63 : vector<2x8x16xf32> to vector<16x16xf32>
    %65 = arith.truncf %64 : vector<16x16xf32> to vector<16x16xbf16>
    %66 = vector.extract_strided_slice %42 {offsets = [0, 0], sizes = [16, 32], strides = [1, 1]} : vector<32x32xbf16> to vector<16x32xbf16>
    %cst_30 = arith.constant dense<0.000000e+00> : vector<16x32xf32>
    %67 = tpu.matmul %65, %66, %cst_30 {dimension_numbers = #tpu.dot_dimension_numbers<[1], [0], [0], [1], [0, 0, 1, 1], [], []>} : vector<16x16xbf16>, vector<16x32xbf16>, vector<16x32xf32> -> vector<16x32xf32>
    %68 = arith.addf %43, %67 : vector<16x32xf32>
    %69 = vector.extract_strided_slice %40 {offsets = [0, 0, 16], sizes = [2, 8, 16], strides = [1, 1, 1]} : vector<2x8x96xbf16> to vector<2x8x16xbf16>
    %70 = vector.extract_strided_slice %40 {offsets = [0, 0, 48], sizes = [2, 8, 16], strides = [1, 1, 1]} : vector<2x8x96xbf16> to vector<2x8x16xbf16>
    %71 = vector.extract_strided_slice %40 {offsets = [0, 0, 80], sizes = [2, 8, 16], strides = [1, 1, 1]} : vector<2x8x96xbf16> to vector<2x8x16xbf16>
    %cst_31 = arith.constant dense<0.000000e+00> : vector<2x8x8xf32>
    %72 = tpu.matmul %69, %70, %cst_31 {dimension_numbers = #tpu.dot_dimension_numbers<[2], [2], [1], [1], [0, 0, 0, 1, 1, 1], [0], [0]>} : vector<2x8x16xbf16>, vector<2x8x16xbf16>, vector<2x8x8xf32> -> vector<2x8x8xf32>
    %c0_32 = arith.constant 0 : index
    %c0_33 = arith.constant 0 : index
    %73 = vector.load %arg2[%c0_32, %c0_33] : memref<8x8xf32, #tpu.memory_space<vmem>>, vector<8x8xf32>
    %74 = vector.shape_cast %73 : vector<8x8xf32> to vector<1x8x8xf32>
    %75 = vector.broadcast %74 : vector<1x8x8xf32> to vector<2x8x8xf32>
    %76 = arith.addf %72, %75 : vector<2x8x8xf32>
    %cst_34 = arith.constant dense<0xFF800000> : vector<2x8xf32>
    %77 = vector.multi_reduction <maximumf>, %76, %cst_34 [2] : vector<2x8x8xf32> to vector<2x8xf32>
    %78 = vector.shape_cast %77 : vector<2x8xf32> to vector<2x8x1xf32>
    %79 = vector.broadcast %78 : vector<2x8x1xf32> to vector<2x8x8xf32>
    %80 = arith.subf %76, %79 : vector<2x8x8xf32>
    %81 = math.exp %80 : vector<2x8x8xf32>
    %cst_35 = arith.constant dense<0.000000e+00> : vector<2x8xf32>
    %82 = vector.multi_reduction <add>, %81, %cst_35 [2] : vector<2x8x8xf32> to vector<2x8xf32>
    %83 = vector.shape_cast %82 : vector<2x8xf32> to vector<2x8x1xf32>
    %84 = tpu.reciprocal %83 {approx = true} : vector<2x8x1xf32> -> vector<2x8x1xf32>
    %85 = vector.broadcast %84 : vector<2x8x1xf32> to vector<2x8x8xf32>
    %86 = arith.mulf %81, %85 : vector<2x8x8xf32>
    %87 = arith.truncf %86 : vector<2x8x8xf32> to vector<2x8x8xbf16>
    %cst_36 = arith.constant dense<0.000000e+00> : vector<2x8x16xf32>
    %88 = tpu.matmul %87, %71, %cst_36 {dimension_numbers = #tpu.dot_dimension_numbers<[2], [1], [1], [2], [0, 0, 0, 1, 1, 2], [0], [0]>} : vector<2x8x8xbf16>, vector<2x8x16xbf16>, vector<2x8x16xf32> -> vector<2x8x16xf32>
    %89 = vector.shape_cast %88 : vector<2x8x16xf32> to vector<16x16xf32>
    %90 = arith.truncf %89 : vector<16x16xf32> to vector<16x16xbf16>
    %91 = vector.extract_strided_slice %42 {offsets = [16, 0], sizes = [16, 32], strides = [1, 1]} : vector<32x32xbf16> to vector<16x32xbf16>
    %cst_37 = arith.constant dense<0.000000e+00> : vector<16x32xf32>
    %92 = tpu.matmul %90, %91, %cst_37 {dimension_numbers = #tpu.dot_dimension_numbers<[1], [0], [0], [1], [0, 0, 1, 1], [], []>} : vector<16x16xbf16>, vector<16x32xbf16>, vector<16x32xf32> -> vector<16x32xf32>
    %93 = arith.addf %68, %92 : vector<16x32xf32>
    %94 = arith.addf %4, %93 : vector<16x32xf32>
    %c0_38 = arith.constant 0 : index
    %c0_39 = arith.constant 0 : index
    %c0_40 = arith.constant 0 : index
    %95 = vector.load %arg9[%c0_38, %c0_39, %c0_40] : memref<1x1x32xf32, #tpu.memory_space<vmem>>, vector<1x1x32xf32>
    %96 = vector.shape_cast %95 : vector<1x1x32xf32> to vector<1x32xf32>
    %97 = vector.broadcast %96 : vector<1x32xf32> to vector<16x32xf32>
    %98 = arith.addf %94, %97 : vector<16x32xf32>
    %c0_41 = arith.constant 0 : index
    %c0_42 = arith.constant 0 : index
    %c0_43 = arith.constant 0 : index
    %99 = vector.load %arg10[%c0_41, %c0_42, %c0_43] : memref<1x1x32xf32, #tpu.memory_space<vmem>>, vector<1x1x32xf32>
    %100 = vector.shape_cast %99 : vector<1x1x32xf32> to vector<1x32xf32>
    %c0_44 = arith.constant 0 : index
    %c0_45 = arith.constant 0 : index
    %c0_46 = arith.constant 0 : index
    %101 = vector.load %arg11[%c0_44, %c0_45, %c0_46] : memref<1x1x32xf32, #tpu.memory_space<vmem>>, vector<1x1x32xf32>
    %102 = vector.shape_cast %101 : vector<1x1x32xf32> to vector<1x32xf32>
    %cst_47 = arith.constant dense<0.000000e+00> : vector<16xf32>
    %103 = vector.multi_reduction <add>, %98, %cst_47 [1] : vector<16x32xf32> to vector<16xf32>
    %104 = vector.shape_cast %103 : vector<16xf32> to vector<16x1xf32>
    %cst_48 = arith.constant 3.200000e+01 : f32
    %105 = vector.broadcast %cst_48 : f32 to vector<16x1xf32>
    %106 = arith.divf %104, %105 : vector<16x1xf32>
    %107 = vector.broadcast %106 : vector<16x1xf32> to vector<16x32xf32>
    %108 = arith.subf %98, %107 : vector<16x32xf32>
    %109 = arith.mulf %108, %108 : vector<16x32xf32>
    %cst_49 = arith.constant dense<0.000000e+00> : vector<16xf32>
    %110 = vector.multi_reduction <add>, %109, %cst_49 [1] : vector<16x32xf32> to vector<16xf32>
    %111 = vector.shape_cast %110 : vector<16xf32> to vector<16x1xf32>
    %cst_50 = arith.constant 3.200000e+01 : f32
    %112 = vector.broadcast %cst_50 : f32 to vector<16x1xf32>
    %113 = arith.divf %111, %112 : vector<16x1xf32>
    %114 = vector.broadcast %106 : vector<16x1xf32> to vector<16x32xf32>
    %115 = arith.subf %98, %114 : vector<16x32xf32>
    %cst_51 = arith.constant 9.99999974E-6 : f32
    %116 = vector.broadcast %cst_51 : f32 to vector<16x1xf32>
    %117 = arith.addf %113, %116 : vector<16x1xf32>
    %118 = math.rsqrt %117 : vector<16x1xf32>
    %119 = vector.broadcast %118 : vector<16x1xf32> to vector<16x32xf32>
    %120 = arith.mulf %115, %119 : vector<16x32xf32>
    %121 = vector.broadcast %100 : vector<1x32xf32> to vector<16x32xf32>
    %122 = arith.mulf %120, %121 : vector<16x32xf32>
    %123 = vector.broadcast %102 : vector<1x32xf32> to vector<16x32xf32>
    %124 = arith.addf %122, %123 : vector<16x32xf32>
    %125 = arith.truncf %124 : vector<16x32xf32> to vector<16x32xbf16>
    %c0_52 = arith.constant 0 : index
    %c0_53 = arith.constant 0 : index
    %c0_54 = arith.constant 0 : index
    %126 = vector.load %arg12[%c0_52, %c0_53, %c0_54] : memref<1x32x64xbf16, #tpu.memory_space<vmem>>, vector<1x32x64xbf16>
    %127 = vector.shape_cast %126 : vector<1x32x64xbf16> to vector<32x64xbf16>
    %cst_55 = arith.constant dense<0.000000e+00> : vector<16x64xf32>
    %128 = tpu.matmul %125, %127, %cst_55 {dimension_numbers = #tpu.dot_dimension_numbers<[1], [0], [0], [1], [0, 0, 1, 1], [], []>} : vector<16x32xbf16>, vector<32x64xbf16>, vector<16x64xf32> -> vector<16x64xf32>
    %c0_56 = arith.constant 0 : index
    %c0_57 = arith.constant 0 : index
    %c0_58 = arith.constant 0 : index
    %129 = vector.load %arg13[%c0_56, %c0_57, %c0_58] : memref<1x1x64xf32, #tpu.memory_space<vmem>>, vector<1x1x64xf32>
    %130 = vector.shape_cast %129 : vector<1x1x64xf32> to vector<1x64xf32>
    %131 = vector.broadcast %130 : vector<1x64xf32> to vector<16x64xf32>
    %132 = arith.addf %128, %131 : vector<16x64xf32>
    %cst_59 = arith.constant 1.702000e+00 : f32
    %133 = vector.broadcast %cst_59 : f32 to vector<16x64xf32>
    %134 = arith.mulf %133, %132 : vector<16x64xf32>
    %135 = arith.negf %134 : vector<16x64xf32>
    %136 = math.exp %135 : vector<16x64xf32>
    %cst_60 = arith.constant 1.000000e+00 : f32
    %137 = vector.broadcast %cst_60 : f32 to vector<16x64xf32>
    %138 = arith.addf %137, %136 : vector<16x64xf32>
    %139 = arith.divf %137, %138 : vector<16x64xf32>
    %140 = arith.mulf %132, %139 : vector<16x64xf32>
    %141 = arith.truncf %140 : vector<16x64xf32> to vector<16x64xbf16>
    %c0_61 = arith.constant 0 : index
    %c0_62 = arith.constant 0 : index
    %c0_63 = arith.constant 0 : index
    %142 = vector.load %arg14[%c0_61, %c0_62, %c0_63] : memref<1x64x32xbf16, #tpu.memory_space<vmem>>, vector<1x64x32xbf16>
    %143 = vector.shape_cast %142 : vector<1x64x32xbf16> to vector<64x32xbf16>
    %cst_64 = arith.constant dense<0.000000e+00> : vector<16x32xf32>
    %144 = tpu.matmul %141, %143, %cst_64 {dimension_numbers = #tpu.dot_dimension_numbers<[1], [0], [0], [1], [0, 0, 1, 1], [], []>} : vector<16x64xbf16>, vector<64x32xbf16>, vector<16x32xf32> -> vector<16x32xf32>
    %c0_65 = arith.constant 0 : index
    %c0_66 = arith.constant 0 : index
    %c0_67 = arith.constant 0 : index
    %145 = vector.load %arg15[%c0_65, %c0_66, %c0_67] : memref<1x1x32xf32, #tpu.memory_space<vmem>>, vector<1x1x32xf32>
    %146 = vector.shape_cast %145 : vector<1x1x32xf32> to vector<1x32xf32>
    %147 = vector.broadcast %146 : vector<1x32xf32> to vector<16x32xf32>
    %148 = arith.addf %144, %147 : vector<16x32xf32>
    %149 = arith.addf %98, %148 : vector<16x32xf32>
    %150 = vector.shape_cast %149 : vector<16x32xf32> to vector<2x8x32xf32>
    %c0_68 = arith.constant 0 : index
    %c0_69 = arith.constant 0 : index
    %c0_70 = arith.constant 0 : index
    %151 = vector.load %arg19[%c0_68, %c0_69, %c0_70] : memref<2x8x32xf32, #tpu.memory_space<vmem>>, vector<2x8x32xf32>
    tpu.vector_store %arg19[%c0_68, %c0_69, %c0_70], %150 {strides = array<i32>} : memref<2x8x32xf32, #tpu.memory_space<vmem>>, vector<2x8x32xf32>,
    %c1_i32 = arith.constant 1 : i32
    %152 = arith.cmpi eq, %arg0, %c1_i32 : i32
    %153 = arith.extui %152 : i1 to i32
    %c0_i32_71 = arith.constant 0 : i32
    %154 = arith.cmpi ne, %153, %c0_i32_71 : i32
    scf.if %154 {
      %c0_72 = arith.constant 0 : index
      %c0_73 = arith.constant 0 : index
      %155 = vector.load %arg16[%c0_72, %c0_73] : memref<1x32xf32, #tpu.memory_space<vmem>>, vector<1x32xf32>
      %c0_74 = arith.constant 0 : index
      %c0_75 = arith.constant 0 : index
      %156 = vector.load %arg17[%c0_74, %c0_75] : memref<1x32xf32, #tpu.memory_space<vmem>>, vector<1x32xf32>
      %cst_76 = arith.constant dense<0.000000e+00> : vector<16xf32>
      %157 = vector.multi_reduction <add>, %149, %cst_76 [1] : vector<16x32xf32> to vector<16xf32>
      %158 = vector.shape_cast %157 : vector<16xf32> to vector<16x1xf32>
      %cst_77 = arith.constant 3.200000e+01 : f32
      %159 = vector.broadcast %cst_77 : f32 to vector<16x1xf32>
      %160 = arith.divf %158, %159 : vector<16x1xf32>
      %161 = vector.broadcast %160 : vector<16x1xf32> to vector<16x32xf32>
      %162 = arith.subf %149, %161 : vector<16x32xf32>
      %163 = arith.mulf %162, %162 : vector<16x32xf32>
      %cst_78 = arith.constant dense<0.000000e+00> : vector<16xf32>
      %164 = vector.multi_reduction <add>, %163, %cst_78 [1] : vector<16x32xf32> to vector<16xf32>
      %165 = vector.shape_cast %164 : vector<16xf32> to vector<16x1xf32>
      %cst_79 = arith.constant 3.200000e+01 : f32
      %166 = vector.broadcast %cst_79 : f32 to vector<16x1xf32>
      %167 = arith.divf %165, %166 : vector<16x1xf32>
      %168 = vector.broadcast %160 : vector<16x1xf32> to vector<16x32xf32>
      %169 = arith.subf %149, %168 : vector<16x32xf32>
      %cst_80 = arith.constant 9.99999974E-6 : f32
      %170 = vector.broadcast %cst_80 : f32 to vector<16x1xf32>
      %171 = arith.addf %167, %170 : vector<16x1xf32>
      %172 = math.rsqrt %171 : vector<16x1xf32>
      %173 = vector.broadcast %172 : vector<16x1xf32> to vector<16x32xf32>
      %174 = arith.mulf %169, %173 : vector<16x32xf32>
      %175 = vector.broadcast %155 : vector<1x32xf32> to vector<16x32xf32>
      %176 = arith.mulf %174, %175 : vector<16x32xf32>
      %177 = vector.broadcast %156 : vector<1x32xf32> to vector<16x32xf32>
      %178 = arith.addf %176, %177 : vector<16x32xf32>
      %c0_81 = arith.constant 0 : index
      %c0_82 = arith.constant 0 : index
      %179 = vector.load %arg3[%c0_81, %c0_82] : memref<2x16xf32, #tpu.memory_space<vmem>>, vector<2x16xf32>
      %cst_83 = arith.constant dense<0.000000e+00> : vector<2x32xf32>
      %180 = tpu.matmul %179, %178, %cst_83 {dimension_numbers = #tpu.dot_dimension_numbers<[1], [0], [0], [1], [0, 0, 1, 1], [], []>} : vector<2x16xf32>, vector<16x32xf32>, vector<2x32xf32> -> vector<2x32xf32>
      %c0_84 = arith.constant 0 : index
      %c0_85 = arith.constant 0 : index
      %181 = vector.load %arg18[%c0_84, %c0_85] : memref<2x32xf32, #tpu.memory_space<vmem>>, vector<2x32xf32>
      tpu.vector_store %arg18[%c0_84, %c0_85], %180 {strides = array<i32>} : memref<2x32xf32, #tpu.memory_space<vmem>>, vector<2x32xf32>,
    } else {
    }
    return
  }
  func.func @transform_0(%arg0: i32) -> (i32, i32, i32) {
    %c0_i32 = arith.constant 0 : i32
    %c0_i32_0 = arith.constant 0 : i32
    %c0_i32_1 = arith.constant 0 : i32
    %c0_i32_2 = arith.constant 0 : i32
    return %c0_i32, %c0_i32_0, %c0_i32_1 : i32, i32, i32
  }
  func.func @transform_1(%arg0: i32) -> (i32, i32) {
    %c0_i32 = arith.constant 0 : i32
    %c0_i32_0 = arith.constant 0 : i32
    %c0_i32_1 = arith.constant 0 : i32
    return %c0_i32, %c0_i32_0 : i32, i32
  }
  func.func @transform_2(%arg0: i32) -> (i32, i32) {
    %c0_i32 = arith.constant 0 : i32
    %c0_i32_0 = arith.constant 0 : i32
    %c0_i32_1 = arith.constant 0 : i32
    return %c0_i32, %c0_i32_0 : i32, i32
  }
  func.func @transform_3(%arg0: i32) -> (i32, i32, i32) {
    %c0_i32 = arith.constant 0 : i32
    %c0_i32_0 = arith.constant 0 : i32
    %c0_i32_1 = arith.constant 0 : i32
    return %arg0, %c0_i32, %c0_i32_0 : i32, i32, i32
  }
  func.func @transform_4(%arg0: i32) -> (i32, i32, i32) {
    %c0_i32 = arith.constant 0 : i32
    %c0_i32_0 = arith.constant 0 : i32
    %c0_i32_1 = arith.constant 0 : i32
    return %arg0, %c0_i32, %c0_i32_0 : i32, i32, i32
  }
  func.func @transform_5(%arg0: i32) -> (i32, i32, i32) {
    %c0_i32 = arith.constant 0 : i32
    %c0_i32_0 = arith.constant 0 : i32
    %c0_i32_1 = arith.constant 0 : i32
    return %arg0, %c0_i32, %c0_i32_0 : i32, i32, i32
  }
  func.func @transform_6(%arg0: i32) -> (i32, i32, i32) {
    %c0_i32 = arith.constant 0 : i32
    %c0_i32_0 = arith.constant 0 : i32
    %c0_i32_1 = arith.constant 0 : i32
    return %arg0, %c0_i32, %c0_i32_0 : i32, i32, i32
  }
  func.func @transform_7(%arg0: i32) -> (i32, i32, i32) {
    %c0_i32 = arith.constant 0 : i32
    %c0_i32_0 = arith.constant 0 : i32
    %c0_i32_1 = arith.constant 0 : i32
    return %arg0, %c0_i32, %c0_i32_0 : i32, i32, i32
  }
  func.func @transform_8(%arg0: i32) -> (i32, i32, i32) {
    %c0_i32 = arith.constant 0 : i32
    %c0_i32_0 = arith.constant 0 : i32
    %c0_i32_1 = arith.constant 0 : i32
    return %arg0, %c0_i32, %c0_i32_0 : i32, i32, i32
  }
  func.func @transform_9(%arg0: i32) -> (i32, i32, i32) {
    %c0_i32 = arith.constant 0 : i32
    %c0_i32_0 = arith.constant 0 : i32
    %c0_i32_1 = arith.constant 0 : i32
    return %arg0, %c0_i32, %c0_i32_0 : i32, i32, i32
  }
  func.func @transform_10(%arg0: i32) -> (i32, i32, i32) {
    %c0_i32 = arith.constant 0 : i32
    %c0_i32_0 = arith.constant 0 : i32
    %c0_i32_1 = arith.constant 0 : i32
    return %arg0, %c0_i32, %c0_i32_0 : i32, i32, i32
  }
  func.func @transform_11(%arg0: i32) -> (i32, i32, i32) {
    %c0_i32 = arith.constant 0 : i32
    %c0_i32_0 = arith.constant 0 : i32
    %c0_i32_1 = arith.constant 0 : i32
    return %arg0, %c0_i32, %c0_i32_0 : i32, i32, i32
  }
  func.func @transform_12(%arg0: i32) -> (i32, i32, i32) {
    %c0_i32 = arith.constant 0 : i32
    %c0_i32_0 = arith.constant 0 : i32
    %c0_i32_1 = arith.constant 0 : i32
    return %arg0, %c0_i32, %c0_i32_0 : i32, i32, i32
  }
  func.func @transform_13(%arg0: i32) -> (i32, i32, i32) {
    %c0_i32 = arith.constant 0 : i32
    %c0_i32_0 = arith.constant 0 : i32
    %c0_i32_1 = arith.constant 0 : i32
    return %arg0, %c0_i32, %c0_i32_0 : i32, i32, i32
  }
  func.func @transform_14(%arg0: i32) -> (i32, i32, i32) {
    %c0_i32 = arith.constant 0 : i32
    %c0_i32_0 = arith.constant 0 : i32
    %c0_i32_1 = arith.constant 0 : i32
    return %arg0, %c0_i32, %c0_i32_0 : i32, i32, i32
  }
  func.func @transform_15(%arg0: i32) -> (i32, i32) {
    %c0_i32 = arith.constant 0 : i32
    %c0_i32_0 = arith.constant 0 : i32
    %c0_i32_1 = arith.constant 0 : i32
    return %c0_i32, %c0_i32_0 : i32, i32
  }
  func.func @transform_16(%arg0: i32) -> (i32, i32) {
    %c0_i32 = arith.constant 0 : i32
    %c0_i32_0 = arith.constant 0 : i32
    %c0_i32_1 = arith.constant 0 : i32
    return %c0_i32, %c0_i32_0 : i32, i32
  }
  func.func @transform_17(%arg0: i32) -> (i32, i32) {
    %c0_i32 = arith.constant 0 : i32
    %c0_i32_0 = arith.constant 0 : i32
    %c0_i32_1 = arith.constant 0 : i32
    return %c0_i32, %c0_i32_0 : i32, i32
  }
}

</mosaic_0001>

<bundles_post_ra>
// kernel: tpu_custom_call.1
= control target key start
LH: loop header
LB: loop body
LE: loop exit
PB: predicated region body
PF: predicated region fallthrough
CT: control target
= control target key end

     0   :  { %s2583_s0 = inlined_call_operand.hbm [shape: f32[2,8,32], index: 0, kind: input, shape index: {}]   ;;  %s2584_s1 = inlined_call_operand.hbm [shape: f32[8,8], index: 1, kind: input, shape index: {}]   ;;  %s2585_s2 = inlined_call_operand.hbm [shape: f32[2,16], index: 2, kind: input, shape index: {}]   ;;  %s2586_s3 = inlined_call_operand.hbm [shape: f32[2,1,32], index: 3, kind: input, shape index: {}]   ;;  %s2587_s4 = inlined_call_operand.vmem [shape: f32[2,1,32], index: 4, kind: input, shape index: {}]   ;;  %s2588_s5 = inlined_call_operand.vmem [shape: bf16[2,32,96], index: 5, kind: input, shape index: {}]   ;;  %s2589_s6 = inlined_call_operand.vmem [shape: f32[2,1,96], index: 6, kind: input, shape index: {}]   ;;  %s2590_s7 = inlined_call_operand.vmem [shape: bf16[2,32,32], index: 7, kind: input, shape index: {}]   ;;  %s2591_s8 = inlined_call_operand.vmem [shape: f32[2,1,32], index: 8, kind: input, shape index: {}]   ;;  %s2592_s9 = inlined_call_operand.hbm [shape: f32[2,1,32], index: 9, kind: input, shape index: {}]   ;;  %s2593_s10 = inlined_call_operand.vmem [shape: f32[2,1,32], index: 10, kind: input, shape index: {}]   ;;  %s2594_s11 = inlined_call_operand.vmem [shape: bf16[2,32,64], index: 11, kind: input, shape index: {}]   ;;  %s2595_s12 = inlined_call_operand.vmem [shape: f32[2,1,64], index: 12, kind: input, shape index: {}]   ;;  %s2596_s13 = inlined_call_operand.vmem [shape: bf16[2,64,32], index: 13, kind: input, shape index: {}]   ;;  %s2597_s14 = inlined_call_operand.vmem [shape: f32[2,1,32], index: 14, kind: input, shape index: {}]   ;;  %s2598_s15 = inlined_call_operand.vmem [shape: f32[1,32], index: 15, kind: input, shape index: {}]   ;;  %s2599_s16 = inlined_call_operand.vmem [shape: f32[1,32], index: 16, kind: input, shape index: {}]   ;;  %s2600_s17 = inlined_call_operand.hbm [shape: f32[2,32], index: 17, kind: output, shape index: {}]  }
   0x1   :  { %2605 = sst [smem:[#allocation20_spill]] %s2583_s0 }
   0x2   :  { %2606 = sst [smem:[#allocation21_spill]] %s2584_s1 }
   0x3   :  { %2607 = sst [smem:[#allocation22_spill]] %s2585_s2 }
   0x4   :  { %2608 = sst [smem:[#allocation23_spill]] %s2586_s3 }
   0x5   :  { %2609 = sst [smem:[#allocation24_spill]] %s2588_s5 }
   0x6   :  { %2610 = sst [smem:[#allocation25_spill]] %s2590_s7 }
   0x7   :  { %2611 = sst [smem:[#allocation26_spill]] %s2591_s8 }
   0x8   :  { %2612 = sst [smem:[#allocation27_spill]] %s2592_s9 }
   0x9   :  { %2613 = sst [smem:[#allocation28_spill]] %s2593_s10 }
   0xa   :  { %2614 = sst [smem:[#allocation29_spill]] %s2594_s11 }
   0xb   :  { %2615 = sst [smem:[#allocation30_spill]] %s2595_s12 }
   0xc   :  { %2616 = sst [smem:[#allocation31_spill]] %s2596_s13 }
   0xd   :  { %2617 = sst [smem:[#allocation32_spill]] %s2597_s14 }
   0xe   :  { %2618 = sst [smem:[#allocation33_spill]] %s2598_s15 }
   0xf   :  { %2619 = sst [smem:[#allocation34_spill]] %s2599_s16 }
  0x10   :  { %2620 = sst [smem:[#allocation35_spill]] %s2600_s17 }
  0x11   :  { %22 = vsyncpa [#allocation4], 0 }
  0x12   :  { %23 = vsyncpa [#allocation7], 0 }
  0x13   :  { %24 = vsyncpa [#allocation10], 0 }
  0x14   :  { %26 = vsyncpa [#allocation10 + $0x1], 0 }
  0x15   :  { %27 = vsyncpa [#allocation5], 0  ;;  %s2243_s24 = smov 0   ;;  %s2245_s25 = smov 0  }
  0x16   :  { %s2247_s26 = smov 0   ;;  %s2249_s27 = smov 0  }
  0x17 LB: > { %2621 = sst [smem:[#allocation17_spill]] %s2135_s26  ;;  %s2262_s28 = sadd.s32 4294967295, %s2139_s27   ;;  %s2139_s27 = sphi %s2249_s27, %s2651_s27   ;;  %s2135_s26 = sphi %s2247_s26, %s2653_s26   ;;  %s2131_s25 = sphi %s2245_s25, %s2655_s25   ;;  %s2127_s24 = sphi %s2243_s24, %s2654_s24  }
  0x18   : > { %p116_p0 = scmp.ne.s32.totalorder %s2131_s25, %s2127_s24  ;;  %p117_p1 = scmp.eq.s32.totalorder %s2262_s28, 0 }
  0x19   : > { %p1684_p2 = scmp.ge.s32.totalorder %s2139_s27, 1  ;;  %p476_p3 = scmp.lt.s32.totalorder %s2139_s27, 3 }
  0x1a   : > { %p1685_p4 = scmp.ne.s32.totalorder %s2262_s28, 0  ;;  %p2271_p5 = por %p117_p1, %p116_p0 }
  0x1b   : > { %s2623_s18 = sld [smem:[#allocation21_spill]]  ;;  %p2278_p6 = pnand %p1684_p2, %p476_p3 }
  0x1c   : > { %s2141_s20 = smov [#allocation6]   ;;  %s2291_s23 = sadd.s32 1, %s2139_s27  }
  0x1d   : > { %p1797_p7 = pneg %p2278_p6  ;;  %s504_s21 = sshll.u32 %s2141_s20, 4  ;;  %s505_s21 = int_to_ptr.vmem [resolvable:$true] %s504_s21 }
  0x1e   : > { %2626 = sst [smem:[#allocation18_spill]] %s2291_s23  ;;  %s103_s24 = sadd.s32 1, %s2135_s26 }
  0x1f   : > { %p2286_p8 = pnand %p1797_p7, %p117_p1  ;;  %s100_s0 = ssub.s32 %s2139_s27, %s2291_s23 }
  0x20   : > { %p101_p9 = scmp.eq.s32.totalorder %s100_s0, 0  ;;  %p110_p10 = scmp.ne.s32.totalorder %s2135_s26, %s2131_s25 }
  0x21   : > { %s502_s19 = sshll.u32 %s2623_s18, 4  ;;  %p111_p11 = scmp.eq.s32.totalorder %s2139_s27, 0  ;;  %s503_s19 = int_to_ptr.hbm [resolvable:$true] %s502_s19 }
  0x22   : > { %1803 = dma.hbm_to_vmem [thread:$0]  (!%p2286_p8), %s503_s19, 128, %s505_s21, [#allocation7]  }
  0x23   : > { %p1817_p12 = scmp.lt.s32.totalorder %s2139_s27, 2  ;;  %p112_p13 = por %p111_p11, %p110_p10 }
  0x24   : > { %s2303_s30 = scalar_select %p101_p9, %s2135_s26, %s103_s24  }
  0x25   : > { %s533_s18 = sand.u32 1, %s2139_s27   ;;  %s2603_s20 = sand.u32 1, %s2135_s26  }
  0x26   : > { %2627 = sst [smem:[#allocation19_spill]] %s2303_s30  ;;  %s536_s13 = scalar_lea.vmem [#allocation9], %s2603_s20 }
  0x27   : > { %s2628_s3 = sld [smem:[#allocation23_spill]]  ;;  %s543_s12 = sshll.u32 %s536_s13, 4  ;;  %s544_s12 = int_to_ptr.vmem [resolvable:$true] %s543_s12 }
  0x28   : > { %p2313_p0 = pnand %p1817_p12, %p112_p13  ;;  %s2630_s0 = sld [smem:[#allocation20_spill]] }
  0x29   : > { %s2320_s23 = scalar_lea.sflag [#allocation10], %s533_s18 }
  0x2a   : > { %p1949_p3 = pneg %p2313_p0 }
  0x2d   : > { %s539_s15 = scalar_lea.hbm %s2628_s3, %s2139_s27  ;;  %s1952_s21 = scalar_lea.hbm %s2628_s3, 2 }
  0x2e   : > { %s541_s14 = sshll.u32 %s539_s15, 4  ;;  %s487_s30 = sshll.u32 %s2630_s0, 4  ;;  %s542_s14 = int_to_ptr.hbm [resolvable:$true] %s541_s14  ;;  %s488_s30 = int_to_ptr.hbm [resolvable:$true] %s487_s30 }
  0x2f   : > { %s1945_s16 = sshra.s32 %s542_s14, 4  ;;  %s1946_s16 = int_to_ptr.hbm [resolvable:$true] %s1945_s16 }
  0x30   : > { %s1947_s15 = scalar_lea.hbm %s1946_s16, 1  ;;  %p1953_p10 = scmp.lt.s32.totalorder %s1946_s16, %s2628_s3 }
  0x31   : > { %p1948_p2 = scmp.ne.s32.totalorder %s1946_s16, %s1947_s15  ;;  %p1954_p11 = scmp.lt.s32.totalorder %s1952_s21, %s1947_s15 }
  0x33   : > { %p1950_p7 = pnand %p1949_p3, %p1948_p2  ;;  %p1955_p12 = por %p1954_p11, %p1953_p10 }
  0x35   : > { %p1951_p9 = pneg %p1950_p7 }
  0x37   : > { %p1956_p13 = pnand %p1955_p12, %p1951_p9 }
  0x39   : > { %1959 = shalt.err (!%p1956_p13)
}
  0x3a   : > { %1810 = dma.hbm_to_vmem [thread:$0]  (!%p2313_p0), %s542_s14, 16, %s544_s12, %s2320_s23  }
  0x3b   : > { %s2142_s18 = smov [#allocation3]   ;;  %s2143_s13 = smov 128  }
  0x3c   : > { %s489_s0 = sshll.u32 %s2142_s18, 4  ;;  %s2144_s17 = smov 8   ;;  %s490_s0 = int_to_ptr.vmem [resolvable:$true] %s489_s0 }
  0x3d   : > { %1800 = dma.hbm_to_vmem [thread:$0]  (!%p2286_p8), %s488_s30, 256, %s490_s0, [#allocation4], %s2143_s13, %s2143_s13, %s2144_s17  }
  0x3e   : > { %s2631_s2 = sld [smem:[#allocation22_spill]]  ;;  %s2145_s21 = smov [#allocation8]  }
  0x3f   : > { %s516_s24 = sshll.u32 %s2145_s21, 4  ;;  %s2632_s9 = sld [smem:[#allocation27_spill]]  ;;  %s517_s24 = int_to_ptr.vmem [resolvable:$true] %s516_s24 }
  0x40   : > { %s2633_s18 = sand.u32 1, %s2135_s26  }
  0x41   : > { %s587_s10 = scalar_lea.vmem [#allocation11], %s2633_s18 }
  0x42   : > { %s594_s8 = sshll.u32 %s587_s10, 4  ;;  %s595_s8 = int_to_ptr.vmem [resolvable:$true] %s594_s8 }
  0x44   : > { %s514_s15 = sshll.u32 %s2631_s2, 4  ;;  %s515_s15 = int_to_ptr.hbm [resolvable:$true] %s514_s15 }
  0x45   : > { %s590_s12 = scalar_lea.hbm %s2632_s9, %s2139_s27  ;;  %s2042_s3 = scalar_lea.hbm %s2632_s9, 2 }
  0x46   : > { %1806 = dma.hbm_to_vmem [thread:$0]  (!%p2286_p8), %s515_s15, 32, %s517_s24, [#allocation7]  }
  0x47   : > { %s592_s14 = sshll.u32 %s590_s12, 4  ;;  %s593_s14 = int_to_ptr.hbm [resolvable:$true] %s592_s14 }
  0x48   : > { %s2035_s30 = sshra.s32 %s593_s14, 4  ;;  %s2036_s30 = int_to_ptr.hbm [resolvable:$true] %s2035_s30 }
  0x49   : > { %s2037_s0 = scalar_lea.hbm %s2036_s30, 1  ;;  %p2043_p8 = scmp.lt.s32.totalorder %s2036_s30, %s2632_s9 }
  0x4a   : > { %p2038_p2 = scmp.ne.s32.totalorder %s2036_s30, %s2037_s0  ;;  %p2044_p10 = scmp.lt.s32.totalorder %s2042_s3, %s2037_s0 }
  0x4c   : > { %p2040_p7 = pnand %p2038_p2, %p1949_p3  ;;  %p2045_p11 = por %p2044_p10, %p2043_p8 }
  0x4e   : > { %p2041_p9 = pneg %p2040_p7 }
  0x50   : > { %p2046_p12 = pnand %p2045_p11, %p2041_p9 }
  0x52   : > { %2049 = shalt.err (!%p2046_p12)
}
  0x53   : > { %1813 = dma.hbm_to_vmem [thread:$0]  (!%p2313_p0), %s593_s14, 16, %s595_s8, %s2320_s23  }
  0x54   : > { %637 = sbr.rel (%p2278_p6) target bundleno = 2327 (0x917), region = 88 }
  0x59   : > { %2110 = dma.done.wait (%p117_p1), [#allocation4], 256  }
  0x5a   : > { %2112 = vsyncadd (%p117_p1), [#allocation4], 4294967040 }
  0x5b   : > { %2114 = dma.done.wait (%p117_p1), [#allocation7], 160  }
  0x5c   : > { %2116 = vsyncadd (%p117_p1), [#allocation7], 4294967136  ;;  %s654_s10 = sand.u32 1, %s2262_s28   ;;  %s656_s8 = sand.u32 1, %s2131_s25  }
  0x5d   : > { %s655_s22 = scalar_lea.sflag [#allocation10], %s654_s10  ;;  %s2373_s1 = scalar_lea.vmem [#allocation9], %s656_s8 }
  0x5e   : > { %2118 = dma.done.wait (%p2271_p5), %s655_s22, 32  }
  0x5f   : > { %2120 = vsyncadd (%p2271_p5), %s655_s22, 4294967264  ;;  %p754_p6 = scmp.lt.s32.totalorder %s2262_s28, 1  ;;  %s2634_s5 = sld [smem:[#allocation24_spill]] }
  0x60   : > { %s2635_s7 = sld [smem:[#allocation25_spill]]  ;;  %s2429_s22 = scalar_lea.vmem [#allocation11], %s656_s8 }
  0x61   : > { %s2381_s23 = scalar_select %p754_p6, %s2262_s28, 1 }
  0x62   : > { %s2636_s11 = sld [smem:[#allocation26_spill]] }
  0x63   : > { %s1763_s15 = sshll.u32 %s2381_s23, 4  ;;  %s2637_s19 = sld [smem:[#allocation28_spill]] }
  0x64   : > { %s2638_s16 = sld [smem:[#allocation29_spill]]  ;;  %s1766_s30 = sshll.u32 %s2381_s23, 5 }
  0x65   : > { %s2391_s24 = scalar_lea.vmem %s2634_s5, %s1763_s15  ;;  %s2639_s18 = sld [smem:[#allocation30_spill]] }
  0x66   : > { %s2400_s13 = scalar_lea.vmem %s2635_s7, %s1763_s15  ;;  %s2640_s9 = sld [smem:[#allocation31_spill]] }
  0x68   : > { %s772_s27 = scalar_lea.vmem %s2636_s11, %s2381_s23  ;;  %s2641_s11 = sld [smem:[#allocation32_spill]] }
  0x69   : > { %s775_s20 = scalar_lea.vmem %s2637_s19, %s2381_s23 }
  0x6a   : > { %s2413_s2 = scalar_lea.vmem %s2638_s16, %s1763_s15  ;;  %796 = sbr.rel (%p1685_p4) target bundleno = 114 (0x72), region = 112 }
  0x6b   : > { %s783_s5 = scalar_lea.vmem %s2639_s18, %s2381_s23 }
  0x6c   : > { %s2423_s26 = scalar_lea.vmem %s2640_s9, %s1766_s30 }
  0x6e   : > { %s791_s10 = scalar_lea.vmem %s2641_s11, %s2381_s23 }
  0x6f   : > { %v797_v0 = vld [vmem:[#allocation3] sm:$0xff]  ;;  %vm799_vm0 = vcmask 261120   ;;  %v798_v1 = vld [vmem:[#allocation3 + $0x8] sm:$0xff] }
  0x70   : > { %800 = vst.msk [vmem:[#allocation2] sm:$0xff] %vm799_vm0, %v797_v0 }
  0x71   : > { %801 = vst.msk [vmem:[#allocation2 + $0x8] sm:$0xff] %vm799_vm0, %v798_v1 }
  0x72 PF: > { %vm806_vm1 = vcmask 261120   ;;  %v2146_v6 = vmov 32.0   ;;  %v1768_v23 = vld [vmem:[%s2391_s24 + $0x8] sm:$0xff]  ;;  %v1767_v25 = vld [vmem:[%s2391_s24] sm:$0xff]  ;;  %s2642_s8 = scalar_lea.vmem %s2587_s4, %s2381_s23  ;;  %s2147_s24 = smov 80   ;;  %vm918_vm9 = vcmask 130048  }
  0x73   : > { %1875 = vrcp.f32 %v2146_v6  ;;  %898 = vmatpush.bf16.msra.mxu0 %v1768_v23  ;;  %v1867_v44 = vld [vmem:[%s2373_s1] ss:$0 sm:$0xff]  ;;  %s2643_s1 = scalar_lea.vmem %s2589_s6, %s2381_s23  ;;  %s2148_s18 = smov 96   ;;  %vm962_vm10 = vcmask 64512   ;;  %vm992_vm11 = vcmask 1043456  }
  0x74   : > { %v1868_v49 = vld [vmem:[%s2642_s8] ss:$0 sm:$0xff]  ;;  %s2149_s19 = smov 112   ;;  %s2150_s29 = smov 64  }
  0x75   : > { %v1869_v54 = vld [vmem:[%s2643_s1] ss:$0 sm:$0xff]  ;;  %s2151_s21 = smov 48   ;;  %p1757_p1 = scmp.ne.s32.totalorder %s2262_s28, 1 }
  0x76   : > { %s2649_s9 = sld [smem:[#allocation34_spill]] (!%p1757_p1) }
  0x77   : > { %v2433_v2 = vld [vmem:[#allocation2] sm:$0xff]  ;;  %899 = vmatpush.bf16.msra.mxu0 %v1767_v25 }
  0x78   : > { %v807_v3 = vsel %vm806_vm1, %v2433_v2, 0.0  ;;  %v2437_v4 = vld [vmem:[#allocation2 + $0x8] sm:$0xff] }
  0x79   : > { %808 = vadd.xlane.f32.xlu0 %v807_v3  ;;  %v810_v5 = vsel %vm806_vm1, %v2437_v4, 0.0  ;;  %v1876_v7 = vpop.eup %1875 }
  0x7a   : > { %v814_v8 = vmul.f32 32.0, %v1876_v7  ;;  %vm818_vm2 = vweird.f32 %v1876_v7 }
  0x7c   : > { %v815_v9 = vsub.f32 1.0, %v814_v8 }
  0x7e   : > { %v816_v10 = vmul.f32 %v1876_v7, %v815_v9 }
  0x80   : > { %v817_v11 = vadd.f32 %v1876_v7, %v816_v10 }
  0x81   : > { %811 = vadd.xlane.f32.xlu0 %v810_v5 }
  0x82   : > { %v2441_v12 = vsel %vm818_vm2, %v1876_v7, %v817_v11 }
  0xec   : > { %v809_v13 = vpop.xlane.xlu0 %808 }
  0xed   : > { %v820_v14 = vmul.f32 %v2441_v12, %v809_v13 }
  0xef   : > { %v822_v15 = vsub.f32 %v2433_v2, %v820_v14  ;;  %v912_v14 = vld [vmem:[#allocation6] sm:$0xff] }
  0xf1   : > { %v824_v16 = vmul.f32 %v822_v15, %v822_v15 }
  0xf3   : > { %v826_v17 = vsel %vm806_vm1, %v824_v16, 0.0 }
  0xf4   : > { %827 = vadd.xlane.f32.xlu1 %v826_v17  ;;  %v812_v18 = vpop.xlane.xlu0 %811 }
  0xf5   : > { %v821_v19 = vmul.f32 %v2441_v12, %v812_v18 }
  0xf7   : > { %v823_v20 = vsub.f32 %v2437_v4, %v821_v19 }
  0xf9   : > { %v825_v21 = vmul.f32 %v823_v20, %v823_v20 }
  0xfb   : > { %v829_v22 = vsel %vm806_vm1, %v825_v21, 0.0 }
  0xfc   : > { %830 = vadd.xlane.f32.xlu1 %v829_v22 }
 0x167   : > { %v828_v24 = vpop.xlane.xlu1 %827 }
 0x168   : > { %v832_v26 = vmul.f32 %v828_v24, %v2441_v12 }
 0x16a   : > { %v834_v27 = vadd.f32 1e-05, %v832_v26 }
 0x16c   : > { %1877 = vrsqrt.f32 %v834_v27  ;;  %vm842_vm4 = vweird.f32 %v834_v27 }
 0x16f   : > { %v831_v28 = vpop.xlane.xlu1 %830 }
 0x170   : > { %v833_v29 = vmul.f32 %v831_v28, %v2441_v12 }
 0x172   : > { %v1878_v30 = vpop.eup %1877  ;;  %v835_v31 = vadd.f32 1e-05, %v833_v29 }
 0x173   : > { %v837_v32 = vmul.f32 %v1878_v30, %v834_v27  ;;  %vm843_vm3 = vweird.f32 %v1878_v30 }
 0x174   : > { %1879 = vrsqrt.f32 %v835_v31  ;;  %vm844_vm5 = vmor %vm842_vm4, %vm843_vm3  ;;  %vm852_vm7 = vweird.f32 %v835_v31 }
 0x175   : > { %v838_v33 = vmul.f32 %v1878_v30, %v837_v32 }
 0x177   : > { %v839_v34 = vmul.f32 0.5, %v838_v33 }
 0x179   : > { %v840_v35 = vsub.f32 1.5, %v839_v34 }
 0x17a   : > { %v1880_v36 = vpop.eup %1879 }
 0x17b   : > { %v841_v37 = vmul.f32 %v1878_v30, %v840_v35  ;;  %v847_v38 = vmul.f32 %v1880_v36, %v835_v31  ;;  %vm853_vm6 = vweird.f32 %v1880_v36 }
 0x17c   : > { %vm854_vm8 = vmor %vm852_vm7, %vm853_vm6 }
 0x17d   : > { %v848_v39 = vmul.f32 %v1880_v36, %v847_v38  ;;  %v845_v40 = vsel %vm844_vm5, %v1878_v30, %v841_v37 }
 0x17e   : > { %v856_v43 = vmul.f32 %v845_v40, %v822_v15 }
 0x17f   : > { %v849_v41 = vmul.f32 0.5, %v848_v39 }
 0x180   : > { %v861_v48 = vmul.f32 %v1867_v44, %v856_v43 }
 0x181   : > { %v850_v42 = vsub.f32 1.5, %v849_v41 }
 0x182   : > { %v866_v51 = vadd.f32 %v1868_v49, %v861_v48 }
 0x183   : > { %v851_v45 = vmul.f32 %v1880_v36, %v850_v42 }
 0x185   : > { %v855_v46 = vsel %vm854_vm8, %v1880_v36, %v851_v45 }
 0x186   : > { %v857_v47 = vmul.f32 %v855_v46, %v823_v20 }
 0x188   : > { %v862_v50 = vmul.f32 %v1867_v44, %v857_v47 }
 0x18a   : > { %v867_v52 = vadd.f32 %v1868_v49, %v862_v50 }
 0x18c   : > { %v868_v53 = vpack.c.bf16 %v867_v52, %v866_v51 }
 0x18e   : > { %1710 = vmatmul.msk.bf16.vlgmr.msra.gmra.mxu0 %vm806_vm1, %v868_v53 }
 0x20b   : > { %v901_v55 = vpop.f32.mrf.mxu0 }
 0x20c   : > { %v902_v56 = vadd.f32 %v1869_v54, %v901_v55 }
 0x20e   : > { %v906_v57 = vpack.c.bf16 %v902_v56, %v902_v56 }
 0x210   : > { %v914_v58 = vunpack.c.l.b16 %v906_v57 }
 0x212   : > { %v915_v59 = vpack.c.b16 %v914_v58, %v914_v58 }
 0x213   : > { %v903_v60 = vpop.f32.mrf.mxu0 }
 0x214   : > { %v904_v61 = vadd.f32 %v1869_v54, %v903_v60  ;;  %1033 = vrot.lane.b32.xlu0 %v915_v59, %s2147_s24  ;;  %916 = vrot.lane.b32.xlu2 %v915_v59, %s2148_s18 }
 0x216   : > { %v907_v62 = vpack.c.bf16 %v904_v61, %v904_v61 }
 0x218   : > { %v939_v63 = vunpack.c.l.b16 %v907_v62 }
 0x21a   : > { %v2465_v0 = vpack.c.b16 %v939_v63, %v939_v63 }
 0x21c   : > { %1056 = vrot.lane.b32.xlu1 %v2465_v0, %s2147_s24  ;;  %941 = vrot.lane.b32.xlu2 %v2465_v0, %s2148_s18 }
 0x224   : > { %1031 = vrot.lane.b32.xlu2 %v915_v59, %s2149_s19 }
 0x22c   : > { %1054 = vrot.lane.b32.xlu2 %v2465_v0, %s2149_s19 }
 0x26e   : > { %v917_v1 = vpop.permute.xlu2 %916 }
 0x26f   : > { %v923_v3 = vsel %vm918_vm9, %v917_v1, 0 }
 0x270   : > { %932 = vmatpush.bf16.xpose.msra.mxu1 %v923_v3 }
 0x276   : > { %v942_v5 = vpop.permute.xlu2 %941 }
 0x277   : > { %1711 = vmatmul.msk.bf16.vlgmr.msra.gmra.mxu1 %vm918_vm9, %v906_v57  ;;  %v947_v6 = vsel %vm918_vm9, %v942_v5, 0 }
 0x278   : > { %956 = vmatpush.bf16.xpose.msra.mxu2 %v947_v6 }
 0x27e   : > { %v1032_v9 = vpop.permute.xlu2 %1031 }
 0x27f   : > { %1712 = vmatmul.msk.bf16.vlgmr.msra.gmra.mxu2 %vm918_vm9, %v907_v62 }
 0x286   : > { %v1034_v7 = vpop.permute.xlu0 %1033  ;;  %v1055_v13 = vpop.permute.xlu2 %1054 }
 0x287   : > { %v1039_v8 = vsel %vm918_vm9, %v1034_v7, 0 }
 0x288   : > { %1048 = vmatpush.bf16.xpose.msrb.mxu0 %v1039_v8 }
 0x28e   : > { %v1057_v10 = vpop.permute.xlu1 %1056 }
 0x28f   : > { %1715 = vmatmul.msk.bf16.vlgmr.msrb.gmra.mxu0 %vm918_vm9, %v1032_v9  ;;  %v1062_v11 = vsel %vm918_vm9, %v1057_v10, 0 }
 0x290   : > { %1071 = vmatpush.bf16.xpose.msrb.mxu1 %v1062_v11 }
 0x297   : > { %1716 = vmatmul.msk.bf16.vlgmr.msrb.gmra.mxu1 %vm918_vm9, %v1055_v13 }
 0x2f4   : > { %v934_v15 = vpop.f32.mrf.mxu1 }
 0x2f5   : > { %v935_v16 = vadd.f32 %v934_v15, %v912_v14  ;;  %v1770_v15 = vld [vmem:[%s2400_s13 + $0x8] sm:$0xff] }
 0x2f6   : > { %1160 = vmatpush.bf16.msra.mxu0 %v1770_v15 }
 0x2f7   : > { %v963_v17 = vsel %vm962_vm10, %v935_v16, -inf }
 0x2f8   : > { %964 = vmax.xlane.f32.xlu2 %v963_v17 }
 0x2fc   : > { %v936_v18 = vpop.f32.mrf.mxu1 }
 0x302   : > { %v958_v19 = vpop.f32.mrf.mxu2 }
 0x303   : > { %v959_v20 = vadd.f32 %v958_v19, %v912_v14 }
 0x305   : > { %v966_v21 = vsel %vm962_vm10, %v959_v20, -inf }
 0x306   : > { %967 = vmax.xlane.f32.xlu0 %v966_v21 }
 0x30a   : > { %v960_v22 = vpop.f32.mrf.mxu2 }
 0x30c   : > { %v1050_v23 = vpop.f32.mrf.mxu0 }
 0x30d   : > { %v1051_v24 = vadd.f32 %v1050_v23, %v912_v14 }
 0x30f   : > { %v1077_v25 = vsel %vm962_vm10, %v1051_v24, -inf }
 0x310   : > { %1078 = vmax.xlane.f32.xlu1 %v1077_v25 }
 0x314   : > { %v1052_v26 = vpop.f32.mrf.mxu0  ;;  %v1073_v27 = vpop.f32.mrf.mxu1 }
 0x315   : > { %v1074_v28 = vadd.f32 %v1073_v27, %v912_v14  ;;  %v1769_v14 = vld [vmem:[%s2400_s13] sm:$0xff] }
 0x316   : > { %1183 = vmatpush.bf16.msra.mxu1 %v1769_v14 }
 0x317   : > { %v1080_v29 = vsel %vm962_vm10, %v1074_v28, -inf }
 0x318   : > { %1081 = vmax.xlane.f32.xlu2 %v1080_v29  ;;  %v1870_v29 = vld [vmem:[%s772_s27] ss:$0 sm:$0xff] }
 0x31a   : > { %1009 = vrot.lane.b32.xlu0 %v2465_v0, %s2150_s29 }
 0x31c   : > { %v1075_v30 = vpop.f32.mrf.mxu1 }
 0x330   : > { %987 = vrot.lane.b32.xlu2 %v915_v59, %s2150_s29 }
 0x338   : > { %1101 = vrot.lane.b32.xlu2 %v915_v59, %s2151_s21 }
 0x36b   : > { %v965_v31 = vpop.xlane.xlu2 %964 }
 0x36c   : > { %v969_v32 = vsub.f32 %v935_v16, %v965_v31 }
 0x36e   : > { %v971_v33 = vmul.f32 1.442695, %v969_v32 }
 0x370   : > { %1881 = vpow2.f32 %v971_v33 }
 0x376   : > { %v1882_v34 = vpop.eup %1881 }
 0x377   : > { %v975_v35 = vsel %vm962_vm10, %v1882_v34, 0.0 }
 0x378   : > { %976 = vadd.xlane.f32.xlu0 %v975_v35 }
 0x379   : > { %v968_v36 = vpop.xlane.xlu0 %967 }
 0x37a   : > { %v970_v37 = vsub.f32 %v959_v20, %v968_v36 }
 0x37c   : > { %v973_v38 = vmul.f32 1.442695, %v970_v37 }
 0x37e   : > { %1883 = vpow2.f32 %v973_v38 }
 0x383   : > { %v1079_v39 = vpop.xlane.xlu1 %1078 }
 0x384   : > { %v1884_v40 = vpop.eup %1883  ;;  %v1083_v41 = vsub.f32 %v1051_v24, %v1079_v39 }
 0x385   : > { %v978_v42 = vsel %vm962_vm10, %v1884_v40, 0.0 }
 0x386   : > { %v1085_v43 = vmul.f32 1.442695, %v1083_v41  ;;  %979 = vadd.xlane.f32.xlu1 %v978_v42 }
 0x388   : > { %1885 = vpow2.f32 %v1085_v43 }
 0x38b   : > { %v1082_v44 = vpop.xlane.xlu2 %1081 }
 0x38c   : > { %v1084_v45 = vsub.f32 %v1074_v28, %v1082_v44  ;;  %1122 = vrot.lane.b32.xlu0 %v2465_v0, %s2151_s21  ;;  %v1010_v49 = vpop.permute.xlu0 %1009 }
 0x38d   : > { %v1015_v52 = vsel %vm992_vm11, %v1010_v49, 0 }
 0x38e   : > { %v1886_v46 = vpop.eup %1885  ;;  %v1087_v47 = vmul.f32 1.442695, %v1084_v45 }
 0x38f   : > { %v1089_v48 = vsel %vm962_vm10, %v1886_v46, 0.0 }
 0x390   : > { %1887 = vpow2.f32 %v1087_v47  ;;  %1090 = vadd.xlane.f32.xlu1 %v1089_v48  ;;  %v1772_v47 = vld [vmem:[%s2413_s2 + $0x8] sm:$0xff] }
 0x393   : > { %v988_v50 = vpop.permute.xlu2 %987 }
 0x394   : > { %v994_v51 = vsel %vm992_vm11, %v988_v50, 0  ;;  %v1771_v50 = vld [vmem:[%s2413_s2] sm:$0xff] }
 0x395   : > { %1003 = vmatpush.bf16.msra.mxu3 %v994_v51 }
 0x396   : > { %v1888_v53 = vpop.eup %1887 }
 0x397   : > { %v1092_v54 = vsel %vm962_vm10, %v1888_v53, 0.0 }
 0x398   : > { %1093 = vadd.xlane.f32.xlu1 %v1092_v54 }
 0x399   : > { %1024 = vmatpush.bf16.msrb.mxu3 %v1015_v52 }
 0x39b   : > { %v1102_v55 = vpop.permute.xlu2 %1101 }
 0x39c   : > { %v1107_v56 = vsel %vm992_vm11, %v1102_v55, 0 }
 0x39d   : > { %1116 = vmatpush.bf16.msrb.mxu2 %v1107_v56 }
 0x3a1   : > { %1284 = vmatpush.bf16.msra.mxu2 %v1772_v47 }
 0x3a5   : > { %1285 = vmatpush.bf16.msra.mxu2 %v1771_v50 }
 0x3eb   : > { %v977_v57 = vpop.xlane.xlu0 %976 }
 0x3ec   : > { %1889 = vrcp.f32 %v977_v57 }
 0x3f2   : > { %v1890_v58 = vpop.eup %1889 }
 0x3f3   : > { %v983_v59 = vmul.f32 %v1890_v58, %v1882_v34 }
 0x3f5   : > { %v985_v60 = vpack.c.bf16 %v983_v59, %v983_v59 }
 0x3f7   : > { %1713 = vmatmul.msk.bf16.vlgmr.msra.gmra.mxu3 %vm962_vm10, %v985_v60 }
 0x3f9   : > { %v980_v61 = vpop.xlane.xlu1 %979 }
 0x3fa   : > { %1891 = vrcp.f32 %v980_v61 }
 0x3fe   : > { %v1123_v62 = vpop.permute.xlu0 %1122 }
 0x3ff   : > { %v1128_v63 = vsel %vm992_vm11, %v1123_v62, 0 }
 0x400   : > { %v1892_v0 = vpop.eup %1891  ;;  %1137 = vmatpush.bf16.msra.mxu3 %v1128_v63 }
 0x401   : > { %v984_v1 = vmul.f32 %v1892_v0, %v1884_v40 }
 0x403   : > { %v1091_v3 = vpop.xlane.xlu1 %1090  ;;  %v986_v5 = vpack.c.bf16 %v984_v1, %v984_v1 }
 0x404   : > { %1893 = vrcp.f32 %v1091_v3 }
 0x407   : > { %1714 = vmatmul.msk.bf16.vlgmr.msrb.gmra.mxu3 %vm962_vm10, %v986_v5  ;;  %v1871_v5 = vld [vmem:[%s2429_s22] ss:$0 sm:$0xff] }
 0x40a   : > { %v1894_v6 = vpop.eup %1893 }
 0x40b   : > { %v1097_v7 = vmul.f32 %v1894_v6, %v1886_v46  ;;  %v1094_v8 = vpop.xlane.xlu1 %1093 }
 0x40c   : > { %1895 = vrcp.f32 %v1094_v8 }
 0x40d   : > { %v1099_v9 = vpack.c.bf16 %v1097_v7, %v1097_v7 }
 0x40f   : > { %1717 = vmatmul.msk.bf16.vlgmr.msrb.gmra.mxu2 %vm962_vm10, %v1099_v9  ;;  %v1872_v9 = vld [vmem:[%s775_s20] ss:$0 sm:$0xff] }
 0x412   : > { %v1896_v10 = vpop.eup %1895 }
 0x413   : > { %v1098_v11 = vmul.f32 %v1896_v10, %v1888_v53 }
 0x415   : > { %v1100_v13 = vpack.c.bf16 %v1098_v11, %v1098_v11 }
 0x417   : > { %1718 = vmatmul.msk.bf16.vlgmr.msra.gmra.mxu3 %vm962_vm10, %v1100_v13 }
 0x47a   : > { %v1005_v16 = vpop.f32.mrf.mxu3 }
 0x482   : > { %v1007_v17 = vpop.f32.mrf.mxu3 }
 0x483   : > { %v1776_v17 = vld [vmem:[%s2423_s26 + $0x18] sm:$0xff] }
 0x484   : > { %1379 = vmatpush.bf16.msrb.mxu3 %v1776_v17 }
 0x48a   : > { %v1026_v18 = vpop.f32.mrf.mxu3 }
 0x48b   : > { %v1030_v19 = vpack.c.bf16 %v1026_v18, %v1005_v16  ;;  %v1873_v18 = vld [vmem:[%s783_s5] ss:$0 sm:$0xff] }
 0x48d   : > { %1728 = vmatmul.msk.bf16.vlgmr.msra.gmra.mxu1 %vm918_vm9, %v1030_v19 }
 0x492   : > { %v1028_v20 = vpop.f32.mrf.mxu3  ;;  %v1118_v21 = vpop.f32.mrf.mxu2 }
 0x493   : > { %v1775_v20 = vld [vmem:[%s2423_s26 + $0x10] sm:$0xff] }
 0x494   : > { %1380 = vmatpush.bf16.msrb.mxu3 %v1775_v20 }
 0x49a   : > { %v1120_v22 = vpop.f32.mrf.mxu2  ;;  %v1139_v23 = vpop.f32.mrf.mxu3 }
 0x49b   : > { %v1143_v24 = vpack.c.bf16 %v1139_v23, %v1118_v21  ;;  %v1774_v23 = vld [vmem:[%s2423_s26 + $0x8] sm:$0xff] }
 0x49c   : > { %1381 = vmatpush.bf16.msrb.mxu3 %v1774_v23 }
 0x49d   : > { %1723 = vmatmul.msk.bf16.vlgmr.msra.gmra.mxu0 %vm918_vm9, %v1143_v24 }
 0x4a2   : > { %v1141_v25 = vpop.f32.mrf.mxu3 }
 0x50a   : > { %v1185_v26 = vpop.f32.mrf.mxu1 }
 0x512   : > { %v1187_v33 = vpop.f32.mrf.mxu1 }
 0x51a   : > { %v1162_v27 = vpop.f32.mrf.mxu0 }
 0x51b   : > { %v1186_v28 = vadd.f32 %v1185_v26, %v1162_v27  ;;  %v1773_v26 = vld [vmem:[%s2423_s26] sm:$0xff] }
 0x51c   : > { %1382 = vmatpush.bf16.msrb.mxu3 %v1773_v26 }
 0x51d   : > { %v1190_v30 = vadd.f32 %v1186_v28, %v2433_v2 }
 0x51f   : > { %v2506_v31 = vadd.f32 %v1870_v29, %v1190_v30 }
 0x521   : > { %v1200_v32 = vsel %vm806_vm1, %v2506_v31, 0.0 }
 0x522   : > { %1201 = vadd.xlane.f32.xlu1 %v1200_v32  ;;  %v1164_v34 = vpop.f32.mrf.mxu0 }
 0x523   : > { %v1188_v35 = vadd.f32 %v1187_v33, %v1164_v34 }
 0x525   : > { %v1191_v36 = vadd.f32 %v1188_v35, %v2437_v4 }
 0x527   : > { %v2511_v37 = vadd.f32 %v1870_v29, %v1191_v36 }
 0x529   : > { %v1203_v38 = vsel %vm806_vm1, %v2511_v37, 0.0 }
 0x52a   : > { %1204 = vadd.xlane.f32.xlu2 %v1203_v38 }
 0x595   : > { %v1202_v39 = vpop.xlane.xlu1 %1201 }
 0x596   : > { %v1206_v2 = vmul.f32 %v1202_v39, %v2441_v12 }
 0x598   : > { %v1208_v40 = vsub.f32 %v2506_v31, %v1206_v2 }
 0x59a   : > { %v1210_v41 = vmul.f32 %v1208_v40, %v1208_v40 }
 0x59c   : > { %v1212_v42 = vsel %vm806_vm1, %v1210_v41, 0.0 }
 0x59d   : > { %1213 = vadd.xlane.f32.xlu0 %v1212_v42  ;;  %v1205_v43 = vpop.xlane.xlu2 %1204 }
 0x59e   : > { %v1207_v4 = vmul.f32 %v1205_v43, %v2441_v12 }
 0x5a0   : > { %v1209_v44 = vsub.f32 %v2511_v37, %v1207_v4 }
 0x5a2   : > { %v1211_v45 = vmul.f32 %v1209_v44, %v1209_v44 }
 0x5a4   : > { %v1215_v46 = vsel %vm806_vm1, %v1211_v45, 0.0 }
 0x5a5   : > { %1216 = vadd.xlane.f32.xlu1 %v1215_v46 }
 0x610   : > { %v1214_v48 = vpop.xlane.xlu0 %1213 }
 0x611   : > { %v1218_v49 = vmul.f32 %v1214_v48, %v2441_v12 }
 0x613   : > { %v1220_v51 = vadd.f32 1e-05, %v1218_v49 }
 0x615   : > { %1897 = vrsqrt.f32 %v1220_v51  ;;  %vm1228_vm13 = vweird.f32 %v1220_v51 }
 0x618   : > { %v1217_v52 = vpop.xlane.xlu1 %1216 }
 0x619   : > { %v1219_v53 = vmul.f32 %v1217_v52, %v2441_v12 }
 0x61b   : > { %v1898_v54 = vpop.eup %1897  ;;  %v1221_v55 = vadd.f32 1e-05, %v1219_v53 }
 0x61c   : > { %v1223_v56 = vmul.f32 %v1898_v54, %v1220_v51  ;;  %vm1229_vm12 = vweird.f32 %v1898_v54 }
 0x61d   : > { %1899 = vrsqrt.f32 %v1221_v55  ;;  %vm1230_vm14 = vmor %vm1228_vm13, %vm1229_vm12  ;;  %vm1238_vm0 = vweird.f32 %v1221_v55  ;;  %vm1371_vm12 = vcmask 523264  }
 0x61e   : > { %v1224_v57 = vmul.f32 %v1898_v54, %v1223_v56 }
 0x620   : > { %v1225_v58 = vmul.f32 0.5, %v1224_v57  ;;  %v1874_v57 = vld [vmem:[%s791_s10] ss:$0 sm:$0xff]  ;;  %s2648_s10 = sld [smem:[#allocation33_spill]] (!%p1757_p1) }
 0x622   : > { %v1226_v59 = vsub.f32 1.5, %v1225_v58 }
 0x623   : > { %v1900_v60 = vpop.eup %1899 }
 0x624   : > { %v1227_v61 = vmul.f32 %v1898_v54, %v1226_v59  ;;  %v1233_v62 = vmul.f32 %v1900_v60, %v1221_v55  ;;  %vm1239_vm15 = vweird.f32 %v1900_v60 }
 0x625   : > { %vm1240_vm2 = vmor %vm1238_vm0, %vm1239_vm15 }
 0x626   : > { %v1234_v63 = vmul.f32 %v1900_v60, %v1233_v62  ;;  %v1231_v0 = vsel %vm1230_vm14, %v1898_v54, %v1227_v61 }
 0x627   : > { %v1242_v6 = vmul.f32 %v1231_v0, %v1208_v40 }
 0x628   : > { %v1235_v1 = vmul.f32 0.5, %v1234_v63 }
 0x629   : > { %v1247_v10 = vmul.f32 %v1871_v5, %v1242_v6 }
 0x62a   : > { %v1236_v3 = vsub.f32 1.5, %v1235_v1 }
 0x62b   : > { %v1252_v14 = vadd.f32 %v1872_v9, %v1247_v10 }
 0x62c   : > { %v1237_v7 = vmul.f32 %v1900_v60, %v1236_v3 }
 0x62e   : > { %v1241_v8 = vsel %vm1240_vm2, %v1900_v60, %v1237_v7 }
 0x62f   : > { %v1243_v11 = vmul.f32 %v1241_v8, %v1209_v44 }
 0x631   : > { %v1248_v13 = vmul.f32 %v1871_v5, %v1243_v11 }
 0x633   : > { %v1253_v15 = vadd.f32 %v1872_v9, %v1248_v13 }
 0x635   : > { %v1254_v16 = vpack.c.bf16 %v1253_v15, %v1252_v14 }
 0x637   : > { %1737 = vmatmul.msk.bf16.vlgmr.msra.gmra.mxu2 %vm806_vm1, %v1254_v16 }
 0x6ba   : > { %v1287_v19 = vpop.f32.mrf.mxu2 }
 0x6bb   : > { %v1288_v21 = vadd.f32 %v1873_v18, %v1287_v19 }
 0x6bd   : > { %v1738_v22 = vmul.f32 -1.702, %v1288_v21 }
 0x6bf   : > { %v1296_v24 = vmul.f32 1.442695, %v1738_v22 }
 0x6c1   : > { %1901 = vpow2.f32 %v1296_v24 }
 0x6c2   : > { %v1289_v25 = vpop.f32.mrf.mxu2 }
 0x6c3   : > { %v1290_v27 = vadd.f32 %v1873_v18, %v1289_v25 }
 0x6c5   : > { %v1739_v28 = vmul.f32 -1.702, %v1290_v27 }
 0x6c7   : > { %v1902_v29 = vpop.eup %1901  ;;  %v1298_v30 = vmul.f32 1.442695, %v1739_v28 }
 0x6c8   : > { %v1300_v32 = vadd.f32 1.0, %v1902_v29 }
 0x6c9   : > { %1903 = vpow2.f32 %v1298_v30 }
 0x6ca   : > { %1905 = vrcp.f32 %v1300_v32  ;;  %v1313_v42 = vand.u32 2147483648, %v1300_v32  ;;  %vm1307_vm4 = vweird.f32 %v1300_v32  ;;  %v1311_v43 = vand.u32 2147483647, %v1300_v32 }
 0x6cc   : > { %v1314_v48 = vor.u32 1.1754944e-38, %v1313_v42  ;;  %vm1312_vm7 = vcmp.eq.f32.partialorder %v1311_v43, 8.507059e+37 }
 0x6cf   : > { %v1904_v33 = vpop.eup %1903 }
 0x6d0   : > { %v1906_v34 = vpop.eup %1905  ;;  %v1301_v35 = vadd.f32 1.0, %v1904_v33 }
 0x6d1   : > { %v1303_v36 = vmul.f32 %v1906_v34, %v1300_v32  ;;  %vm1308_vm3 = vweird.f32 %v1906_v34 }
 0x6d2   : > { %1907 = vrcp.f32 %v1301_v35  ;;  %vm1309_vm5 = vmor %vm1307_vm4, %vm1308_vm3  ;;  %v1328_v44 = vand.u32 2147483648, %v1301_v35  ;;  %v1326_v47 = vand.u32 2147483647, %v1301_v35  ;;  %vm1322_vm8 = vweird.f32 %v1301_v35 }
 0x6d3   : > { %v1304_v38 = vsub.f32 1.0, %v1303_v36 }
 0x6d4   : > { %v1329_v51 = vor.u32 1.1754944e-38, %v1328_v44  ;;  %vm1327_vm11 = vcmp.eq.f32.partialorder %v1326_v47, 8.507059e+37 }
 0x6d5   : > { %v1305_v39 = vmul.f32 %v1906_v34, %v1304_v38 }
 0x6d7   : > { %v1306_v40 = vadd.f32 %v1906_v34, %v1305_v39 }
 0x6d8   : > { %v1908_v2 = vpop.eup %1907 }
 0x6d9   : > { %v1318_v41 = vmul.f32 %v1908_v2, %v1301_v35  ;;  %v1310_v45 = vsel %vm1309_vm5, %v1906_v34, %v1306_v40  ;;  %vm1323_vm6 = vweird.f32 %v1908_v2 }
 0x6da   : > { %v1315_v50 = vsel %vm1312_vm7, %v1314_v48, %v1310_v45  ;;  %vm1324_vm10 = vmor %vm1322_vm8, %vm1323_vm6 }
 0x6db   : > { %v1319_v4 = vsub.f32 1.0, %v1318_v41  ;;  %v1332_v54 = vmul.f32 %v1315_v50, %v1288_v21 }
 0x6dd   : > { %v1320_v46 = vmul.f32 %v1908_v2, %v1319_v4 }
 0x6df   : > { %v1321_v49 = vadd.f32 %v1908_v2, %v1320_v46 }
 0x6e1   : > { %v1325_v52 = vsel %vm1324_vm10, %v1908_v2, %v1321_v49 }
 0x6e2   : > { %v1330_v53 = vsel %vm1327_vm11, %v1329_v51, %v1325_v52 }
 0x6e3   : > { %v1333_v55 = vmul.f32 %v1330_v53, %v1290_v27 }
 0x6e5   : > { %v1334_v56 = vpack.c.bf16 %v1333_v55, %v1332_v54 }
 0x6e7   : > { %1756 = vmatmul.msk.bf16.vlgmr.msrb.gmra.mxu3 %vm1371_vm12, %v1334_v56 }
 0x76a   : > { %v1384_v58 = vpop.f32.mrf.mxu3 }
 0x76b   : > { %v1385_v59 = vadd.f32 %v1874_v57, %v1384_v58 }
 0x76d   : > { %v1389_v60 = vadd.f32 %v1385_v59, %v2506_v31 }
 0x76f   : > { %1391 = vst.msk [vmem:[#allocation2] sm:$0xff] %vm806_vm1, %v1389_v60 }
 0x772   : > { %v1386_v61 = vpop.f32.mrf.mxu3 }
 0x773   : > { %v1387_v62 = vadd.f32 %v1874_v57, %v1386_v61  ;;  %1396 = sbr.rel (%p1757_p1) target bundleno = 2316 (0x90c), region = 116 }
 0x775   : > { %v1390_v63 = vadd.f32 %v1387_v62, %v2511_v37 }
 0x777   : > { %1392 = vst.msk [vmem:[#allocation2 + $0x8] sm:$0xff] %vm806_vm1, %v1390_v63 }
 0x778   : > { %v1402_v0 = vsel %vm806_vm1, %v1390_v63, 0.0  ;;  %v1399_v1 = vsel %vm806_vm1, %v1389_v60, 0.0  ;;  %v1909_v27 = vld [vmem:[%s2648_s10] ss:$0 sm:$0xff]  ;;  %v1453_v41 = vld [vmem:[#allocation8] sm:$0x3] }
 0x779   : > { %1403 = vadd.xlane.f32.xlu0 %v1402_v0  ;;  %v1910_v30 = vld [vmem:[%s2649_s9] ss:$0 sm:$0xff]  ;;  %vm1477_vm3 = vcmask 254976  }
 0x781   : > { %1400 = vadd.xlane.f32.xlu0 %v1399_v1 }
 0x7ec   : > { %v1404_v3 = vpop.xlane.xlu0 %1403 }
 0x7ed   : > { %v1406_v31 = vmul.f32 %v1404_v3, %v2441_v12 }
 0x7ef   : > { %v1408_v5 = vsub.f32 %v1390_v63, %v1406_v31 }
 0x7f1   : > { %v1410_v6 = vmul.f32 %v1408_v5, %v1408_v5 }
 0x7f3   : > { %v1414_v7 = vsel %vm806_vm1, %v1410_v6, 0.0 }
 0x7f4   : > { %1415 = vadd.xlane.f32.xlu1 %v1414_v7  ;;  %v1401_v37 = vpop.xlane.xlu0 %1400 }
 0x7f5   : > { %v1405_v8 = vmul.f32 %v1401_v37, %v2441_v12 }
 0x7f7   : > { %v1407_v9 = vsub.f32 %v1389_v60, %v1405_v8 }
 0x7f9   : > { %v1409_v10 = vmul.f32 %v1407_v9, %v1407_v9 }
 0x7fb   : > { %v1411_v11 = vsel %vm806_vm1, %v1409_v10, 0.0 }
 0x7fc   : > { %1412 = vadd.xlane.f32.xlu1 %v1411_v11 }
 0x867   : > { %v1416_v13 = vpop.xlane.xlu1 %1415 }
 0x868   : > { %v1418_v14 = vmul.f32 %v1416_v13, %v2441_v12 }
 0x86a   : > { %v1420_v15 = vadd.f32 1e-05, %v1418_v14 }
 0x86c   : > { %1911 = vrsqrt.f32 %v1420_v15  ;;  %vm1437_vm14 = vweird.f32 %v1420_v15 }
 0x86f   : > { %v1413_v16 = vpop.xlane.xlu1 %1412 }
 0x870   : > { %v1417_v17 = vmul.f32 %v1413_v16, %v2441_v12 }
 0x872   : > { %v1912_v18 = vpop.eup %1911  ;;  %v1419_v19 = vadd.f32 1e-05, %v1417_v17 }
 0x873   : > { %v1432_v20 = vmul.f32 %v1912_v18, %v1420_v15  ;;  %vm1438_vm13 = vweird.f32 %v1912_v18 }
 0x874   : > { %1913 = vrsqrt.f32 %v1419_v19  ;;  %vm1439_vm1 = vmor %vm1437_vm14, %vm1438_vm13  ;;  %vm1427_vm0 = vweird.f32 %v1419_v19 }
 0x875   : > { %v1433_v21 = vmul.f32 %v1912_v18, %v1432_v20 }
 0x877   : > { %v1434_v22 = vmul.f32 0.5, %v1433_v21 }
 0x879   : > { %v1435_v23 = vsub.f32 1.5, %v1434_v22 }
 0x87a   : > { %v1914_v24 = vpop.eup %1913 }
 0x87b   : > { %v1422_v25 = vmul.f32 %v1914_v24, %v1419_v19  ;;  %v1436_v26 = vmul.f32 %v1912_v18, %v1435_v23  ;;  %vm1428_vm15 = vweird.f32 %v1914_v24 }
 0x87c   : > { %vm1429_vm2 = vmor %vm1427_vm0, %vm1428_vm15 }
 0x87d   : > { %v1423_v28 = vmul.f32 %v1914_v24, %v1422_v25  ;;  %v1440_v29 = vsel %vm1439_vm1, %v1912_v18, %v1436_v26 }
 0x87e   : > { %v1442_v12 = vmul.f32 %v1440_v29, %v1408_v5 }
 0x87f   : > { %v1424_v32 = vmul.f32 0.5, %v1423_v28 }
 0x880   : > { %v1447_v33 = vmul.f32 %v1909_v27, %v1442_v12 }
 0x881   : > { %v1425_v34 = vsub.f32 1.5, %v1424_v32 }
 0x882   : > { %v1452_v35 = vadd.f32 %v1910_v30, %v1447_v33 }
 0x883   : > { %v1426_v36 = vmul.f32 %v1914_v24, %v1425_v34 }
 0x884   : > { %1471 = vmatpush.msra.mxu0 %v1452_v35 }
 0x885   : > { %v1430_v38 = vsel %vm1429_vm2, %v1914_v24, %v1426_v36 }
 0x886   : > { %v1441_v39 = vmul.f32 %v1430_v38, %v1407_v9 }
 0x888   : > { %v1446_v2 = vmul.f32 %v1909_v27, %v1441_v39 }
 0x88a   : > { %v1451_v40 = vadd.f32 %v1910_v30, %v1446_v2 }
 0x88c   : > { %1472 = vmatpush.msra.mxu0 %v1451_v40 }
 0x88d   : > { %1758 = vmatmul.msk.f32.vlgmr.msra.gmra.mxu0 %vm918_vm9, %v1453_v41 }
 0x90a   : > { %v1474_v42 = vpop.f32.mrf.mxu0 }
 0x90b   : > { %1478 = vst.msk [vmem:[#allocation12] sm:$0x3] %vm1477_vm3, %v1474_v42 }
 0x90c PF: > { %p1821_p4 = scmp.eq.s32.totalorder %s2262_s28, 1  ;;  %s2152_s8 = smov [#allocation12]  }
 0x90d   : > { %s1485_s16 = sshll.u32 %s2152_s8, 4  ;;  %s2650_s24 = sld [smem:[#allocation35_spill]]  ;;  %s1486_s16 = int_to_ptr.vmem [resolvable:$true] %s1485_s16 }
 0x913   : > { %s1487_s18 = sshll.u32 %s2650_s24, 4  ;;  %s1488_s18 = int_to_ptr.hbm [resolvable:$true] %s1487_s18 }
 0x914   : > { %1794 = dma.vmem_to_hbm [thread:$0]  (%p1821_p4), %s1486_s16, 32, %s1488_s18, [#allocation5]  }
 0x915   : > { %2122 = dma.done.wait (%p1821_p4), [#allocation5], 32  }
 0x916   : > { %2124 = vsyncadd (%p1821_p4), [#allocation5], 4294967264 }
 0x917 PF: > { %s2651_s27 = sld [smem:[#allocation18_spill]]  ;;  %s2654_s24 = smov %s2131_s25 }
 0x918   : > { %s2652_s19 = sld [smem:[#allocation17_spill]] }
 0x919   : > { %s2653_s26 = sld [smem:[#allocation19_spill]] }
 0x91d   : > { %p30_p5 = scmp.ge.s32.totalorder %s2651_s27, 4  }
 0x91e   : > { %s2655_s25 = smov %s2652_s19 }
 0x91f   :  { %32 = sbr.rel (!%p30_p5) target bundleno = 23 (0x17), region = 187 }
 0x924   :  { %1501 = vsyncpa [#allocation4], 1 }
 0x925   :  { %1503 = vsyncpa [#allocation4 + $0x1], 1 }
 0x926   :  { %1504 = vsyncpa [#allocation7], 1 }
 0x927   :  { %1505 = vsyncpa [#allocation10], 1 }
 0x928   :  { %1507 = vsyncpa [#allocation10 + $0x1], 1 }
 0x929   :  { %1508 = vsyncpa [#allocation5], 1 }
 0x92a   :  { %1510 = vsyncpa [#allocation5 + $0x1], 1 }

</bundles_post_ra>
